<compile_context>
chip_gen: v5e
topology: v5e:2x2
jax: 0.10.0
libtpu: 0.0.40
codegen_flags: <defaults>
</compile_context>

<pallas_src>
import functools

import numpy as np
import jax
import jax.numpy as jnp
from jax import lax
from jax.experimental import pallas as pl
from jax.experimental.pallas import tpu as pltpu


def _round_up(x, m):
    return ((x + m - 1) // m) * m


def _pad_to(a, shape):
    pads = [(0, t - s) for s, t in zip(a.shape, shape)]
    if all(p == (0, 0) for p in pads):
        return a
    return jnp.pad(a, pads)


def build_psp_matrix(H, W, sizes=(1, 3, 6, 8)):
    """Adaptive-avg-pool (PSPModule) expressed as a pooling matrix P of shape (S, HW),
    S = sum(s*s), so that pooled = P @ feat_flat with feat_flat of shape (HW, C)."""
    rows = []
    for s in sizes:
        for i in range(s):
            h0 = (i * H) // s
            h1 = -((-(i + 1) * H) // s)       # ceil((i+1)*H/s)
            for j in range(s):
                w0 = (j * W) // s
                w1 = -((-(j + 1) * W) // s)
                m = np.zeros((H, W), np.float32)
                m[h0:h1, w0:w1] = 1.0 / float((h1 - h0) * (w1 - w0))
                rows.append(m.reshape(-1))
    return jnp.asarray(np.stack(rows, axis=0))  # (S, H*W)


def _apnb_attn_kernel(x_ref, kqw_ref, kqb_ref, keyp_ref, valp_ref, ww_ref, wb_ref,
                      o_ref, *, inv_sqrt_ck, s_valid):
    x = x_ref[0]                                                   # (TQ, Cp) bf16

    # f_query == f_key : 1x1 conv (+ folded eval-mode BN) + ReLU, f32 accumulation.
    q = jnp.dot(x, kqw_ref[...], preferred_element_type=jnp.float32) + kqb_ref[...]
    q = jnp.maximum(q, 0.0).astype(jnp.bfloat16)                   # (TQ, Ckp)

    key_p = keyp_ref[0]                                            # (Sp, Ckp) bf16
    val_p = valp_ref[0]                                            # (Sp, Cvp) bf16

    # sim = Ck^-0.5 * Q @ K_psp^T ; contract on the channel dim (no XLU transpose).
    sim = lax.dot_general(q, key_p, dimension_numbers=(((1,), (1,)), ((), ())),
                          preferred_element_type=jnp.float32) * inv_sqrt_ck   # (TQ, Sp)

    # Mask the zero-padded pooled positions before softmax (static branch).
    if s_valid < sim.shape[-1]:
        col = lax.broadcasted_iota(jnp.int32, sim.shape, 1)
        sim = jnp.where(col < s_valid, sim, -1e30)

    m = jnp.max(sim, axis=-1, keepdims=True)
    e = jnp.exp(sim - m)
    p = e * pl.reciprocal(jnp.sum(e, axis=-1, keepdims=True), approx=True)

    ctx = jnp.dot(p.astype(jnp.bfloat16), val_p,
                  preferred_element_type=jnp.float32)                         # (TQ, Cvp)
    # W : 1x1 conv value_channels -> out_channels
    ctx = jnp.dot(ctx.astype(jnp.bfloat16), ww_ref[...],
                  preferred_element_type=jnp.float32) + wb_ref[...]           # (TQ, Cp)

    # APNB: output = context + feats
    o_ref[0] = (ctx + x.astype(jnp.float32)).astype(o_ref.dtype)


def apnb_forward(x_nchw, params, psp_sizes=(1, 3, 6, 8)):
    N, C, H, W = x_nchw.shape
    HW = H * W
    # NCHW -> (N, HW, C).
    # TODO(synk): callers that already keep NHWC activations can drop this transpose
    # pair entirely (it is a full HBM round trip outside the kernel).
    x = jnp.transpose(x_nchw, (0, 2, 3, 1)).reshape(N, HW, C).astype(jnp.float32)

    P = build_psp_matrix(H, W, psp_sizes)                          # (S, HW)
    S = P.shape[0]

    # Fold BatchNorm (eval) into the 1x1 f_key/f_query conv.
    eps = 1e-5
    scale = params["bn_gamma"] / jnp.sqrt(params["bn_var"] + eps)  # (Ck,)
    kq_w = params["kq_w"] * scale[None, :]                         # (C, Ck)
    kq_b = (params["kq_b"] - params["bn_mean"]) * scale + params["bn_beta"]   # (Ck,)
    v_w, v_b = params["v_w"], params["v_b"]                        # (C, Cv), (Cv,)
    w_w, w_b = params["w_w"], params["w_b"]                        # (Cv, Co), (Co,)

    Ck, Cv, Co = kq_w.shape[1], v_w.shape[1], w_w.shape[1]
    assert Co == C, "APNB requires out_channels == in_channels for context + feats"

    # ---- Pooled key/value precompute (only S ~ 110 rows; tiny XLA einsums) ----
    # Key path needs the full ReLU'd projection; value pooling commutes with the
    # linear f_value conv (P rows sum to 1), so no HW-sized fv is ever built.
    fk = jax.nn.relu(jnp.einsum("nqc,ck->nqk", x, kq_w) + kq_b)    # (N, HW, Ck)
    key_p = jnp.einsum("sq,nqk->nsk", P, fk)                       # (N, S, Ck)
    val_p = jnp.einsum("sq,nqc->nsc", P, x) @ v_w + v_b            # (N, S, Cv)

    # ---- Pad to MXU / vreg friendly sizes (lane dim multiples of 128) ----
    Cp = _round_up(C, 128)
    Ckp = _round_up(Ck, 128)
    Cvp = _round_up(Cv, 128)
    Sp = _round_up(S, 128)

    x_p = _pad_to(x, (N, HW, Cp)).astype(jnp.bfloat16)
    kq_w_p = _pad_to(kq_w, (Cp, Ckp)).astype(jnp.bfloat16)
    kq_b_p = _pad_to(kq_b[None, :], (1, Ckp))                      # f32; padded key chans stay 0
    key_p_p = _pad_to(key_p, (N, Sp, Ckp)).astype(jnp.bfloat16)    # zero rows -> masked in softmax
    val_p_p = _pad_to(val_p, (N, Sp, Cvp)).astype(jnp.bfloat16)
    w_w_p = _pad_to(w_w, (Cvp, Cp)).astype(jnp.bfloat16)           # zero rows/cols keep output exact
    w_b_p = _pad_to(w_b[None, :], (1, Cp))                         # f32

    # Query-row tile: 512-1024 rows when possible; must divide HW.
    TQ = next((t for t in (1024, 512, 256, 128, 64, 32, 16, 8) if HW % t == 0), HW)

    kernel = functools.partial(_apnb_attn_kernel,
                               inv_sqrt_ck=float(Ck) ** (-0.5), s_valid=S)

    out = pl.pallas_call(
        kernel,
        out_shape=jax.ShapeDtypeStruct((N, HW, Cp), jnp.float32),
        grid_spec=pltpu.PrefetchScalarGridSpec(
            num_scalar_prefetch=0,
            grid=(N, HW // TQ),
            in_specs=[
                pl.BlockSpec((1, TQ, Cp), lambda n, q: (n, q, 0)),    # x tile (query + residual)
                pl.BlockSpec((Cp, Ckp), lambda n, q: (0, 0)),         # folded f_key/f_query weight
                pl.BlockSpec((1, Ckp), lambda n, q: (0, 0)),          # folded f_key/f_query bias
                pl.BlockSpec((1, Sp, Ckp), lambda n, q: (n, 0, 0)),   # pooled keys   (per image)
                pl.BlockSpec((1, Sp, Cvp), lambda n, q: (n, 0, 0)),   # pooled values (per image)
                pl.BlockSpec((Cvp, Cp), lambda n, q: (0, 0)),         # W weight
                pl.BlockSpec((1, Cp), lambda n, q: (0, 0)),           # W bias
            ],
            out_specs=pl.BlockSpec((1, TQ, Cp), lambda n, q: (n, q, 0)),
        ),
        compiler_params=pltpu.CompilerParams(
            dimension_semantics=("parallel", "parallel")),
    )(x_p, kq_w_p, kq_b_p, key_p_p, val_p_p, w_w_p, w_b_p)

    out = out[:, :, :C]                                            # drop padded channels
    return out.reshape(N, H, W, C).transpose(0, 3, 1, 2)


def apnb_reference(x_nchw, params, psp_sizes=(1, 3, 6, 8)):
    """Pure-JAX f32 reference for correctness checking (same math as the module)."""
    N, C, H, W = x_nchw.shape
    HW = H * W
    x = jnp.transpose(x_nchw, (0, 2, 3, 1)).reshape(N, HW, C).astype(jnp.float32)
    P = build_psp_matrix(H, W, psp_sizes)
    eps = 1e-5
    scale = params["bn_gamma"] / jnp.sqrt(params["bn_var"] + eps)
    kq_w = params["kq_w"] * scale[None, :]
    kq_b = (params["kq_b"] - params["bn_mean"]) * scale + params["bn_beta"]

    fk = jax.nn.relu(jnp.einsum("nsc,ck->nsk", x, kq_w) + kq_b)
    fv = jnp.einsum("nsc,cv->nsv", x, params["v_w"]) + params["v_b"]
    key_p = jnp.einsum("ps,nsk->npk", P, fk)
    val_p = jnp.einsum("ps,nsv->npv", P, fv)
    sim = jnp.einsum("nsk,npk->nsp", fk, key_p) * (kq_w.shape[1] ** -0.5)
    sim = jax.nn.softmax(sim, axis=-1)
    ctx = jnp.einsum("nsp,npv->nsv", sim, val_p)
    ctx = jnp.einsum("nsv,vo->nso", ctx, params["w_w"]) + params["w_b"]
    out = ctx + x
    return out.reshape(N, H, W, C).transpose(0, 3, 1, 2)


if __name__ == "__main__":
    # Small shapes consistent with the module: NCHW input, in_channels == out_channels.
    N, C, H, W = 2, 32, 16, 16
    Ck, Cv = 16, 16   # key_channels, value_channels
    Co = C            # out_channels (must equal in_channels for context + feats)

    key = jax.random.PRNGKey(0)
    ks = jax.random.split(key, 9)

    x = jax.random.normal(ks[0], (N, C, H, W), dtype=jnp.float32)

    # Deterministic synthetic parameters (the PyTorch __init__ zero-inits the W conv,
    # which would make context == 0; small random weights give a non-trivial kernel).
    params = {
        "kq_w": 0.1 * jax.random.normal(ks[1], (C, Ck), dtype=jnp.float32),
        "kq_b": 0.1 * jax.random.normal(ks[2], (Ck,), dtype=jnp.float32),
        "bn_gamma": 1.0 + 0.05 * jax.random.normal(ks[3], (Ck,), dtype=jnp.float32),
        "bn_beta": 0.05 * jax.random.normal(ks[4], (Ck,), dtype=jnp.float32),
        "bn_mean": 0.05 * jax.random.normal(ks[5], (Ck,), dtype=jnp.float32),
        "bn_var": jnp.abs(1.0 + 0.05 * jax.random.normal(ks[6], (Ck,), dtype=jnp.float32)),
        "v_w": 0.1 * jax.random.normal(ks[7], (C, Cv), dtype=jnp.float32),
        "v_b": jnp.zeros((Cv,), dtype=jnp.float32),
        "w_w": 0.1 * jax.random.normal(ks[8], (Cv, Co), dtype=jnp.float32),
        "w_b": jnp.zeros((Co,), dtype=jnp.float32),
    }

    out = jax.block_until_ready(apnb_forward(x, params))
    ref = jax.block_until_ready(apnb_reference(x, params))

    # bf16 matmul operands + approx reciprocal => relaxed tolerance vs. the f32 reference.
    np.testing.assert_allclose(np.asarray(out), np.asarray(ref), rtol=2e-2, atol=2e-2)

    print("KERNEL_OK")
</pallas_src>

<mosaic_0001>
module attributes {stable_mosaic.version = 11 : i64} {
  func.func @_apnb_attn_kernel(%arg0: i32, %arg1: i32, %arg2: memref<1x256x128xbf16, #tpu.memory_space<vmem>>, %arg3: memref<128x128xbf16, #tpu.memory_space<vmem>>, %arg4: memref<1x128xf32, #tpu.memory_space<vmem>>, %arg5: memref<1x128x128xbf16, #tpu.memory_space<vmem>>, %arg6: memref<1x128x128xbf16, #tpu.memory_space<vmem>>, %arg7: memref<128x128xbf16, #tpu.memory_space<vmem>>, %arg8: memref<1x128xf32, #tpu.memory_space<vmem>>, %arg9: memref<1x256x128xf32, #tpu.memory_space<vmem>>) attributes {dimension_semantics = [#tpu.dimension_semantics<parallel>, #tpu.dimension_semantics<parallel>], iteration_bounds = array<i64: 2, 1>, scalar_prefetch = 0 : i64, scratch_operands = 0 : i64, tpu.core_type = #tpu.core_type<tc>, window_params = [{transform_indices = @transform_0, window_bounds = array<i64: 1, 256, 128>}, {pipeline_mode = #tpu.pipeline_mode<synchronous>, transform_indices = @transform_1, window_bounds = array<i64: 128, 128>}, {pipeline_mode = #tpu.pipeline_mode<synchronous>, transform_indices = @transform_2, window_bounds = array<i64: 1, 128>}, {transform_indices = @transform_3, window_bounds = array<i64: 1, 128, 128>}, {transform_indices = @transform_4, window_bounds = array<i64: 1, 128, 128>}, {pipeline_mode = #tpu.pipeline_mode<synchronous>, transform_indices = @transform_5, window_bounds = array<i64: 128, 128>}, {pipeline_mode = #tpu.pipeline_mode<synchronous>, transform_indices = @transform_6, window_bounds = array<i64: 1, 128>}, {transform_indices = @transform_7, window_bounds = array<i64: 1, 256, 128>}]} {
    %c0 = arith.constant 0 : index
    %c0_0 = arith.constant 0 : index
    %c0_1 = arith.constant 0 : index
    %0 = vector.load %arg2[%c0, %c0_0, %c0_1] : memref<1x256x128xbf16, #tpu.memory_space<vmem>>, vector<1x256x128xbf16>
    %1 = vector.shape_cast %0 : vector<1x256x128xbf16> to vector<256x128xbf16>
    %c0_2 = arith.constant 0 : index
    %c0_3 = arith.constant 0 : index
    %2 = vector.load %arg3[%c0_2, %c0_3] : memref<128x128xbf16, #tpu.memory_space<vmem>>, vector<128x128xbf16>
    %cst = arith.constant dense<0.000000e+00> : vector<256x128xf32>
    %3 = tpu.matmul %1, %2, %cst {dimension_numbers = #tpu.dot_dimension_numbers<[1], [0], [0], [1], [0, 0, 1, 1], [], []>} : vector<256x128xbf16>, vector<128x128xbf16>, vector<256x128xf32> -> vector<256x128xf32>
    %c0_4 = arith.constant 0 : index
    %c0_5 = arith.constant 0 : index
    %4 = vector.load %arg4[%c0_4, %c0_5] : memref<1x128xf32, #tpu.memory_space<vmem>>, vector<1x128xf32>
    %5 = vector.broadcast %4 : vector<1x128xf32> to vector<256x128xf32>
    %6 = arith.addf %3, %5 : vector<256x128xf32>
    %cst_6 = arith.constant 0.000000e+00 : f32
    %7 = vector.broadcast %cst_6 : f32 to vector<256x128xf32>
    %8 = arith.maximumf %6, %7 : vector<256x128xf32>
    %9 = arith.truncf %8 : vector<256x128xf32> to vector<256x128xbf16>
    %c0_7 = arith.constant 0 : index
    %c0_8 = arith.constant 0 : index
    %c0_9 = arith.constant 0 : index
    %10 = vector.load %arg5[%c0_7, %c0_8, %c0_9] : memref<1x128x128xbf16, #tpu.memory_space<vmem>>, vector<1x128x128xbf16>
    %11 = vector.shape_cast %10 : vector<1x128x128xbf16> to vector<128x128xbf16>
    %c0_10 = arith.constant 0 : index
    %c0_11 = arith.constant 0 : index
    %c0_12 = arith.constant 0 : index
    %12 = vector.load %arg6[%c0_10, %c0_11, %c0_12] : memref<1x128x128xbf16, #tpu.memory_space<vmem>>, vector<1x128x128xbf16>
    %13 = vector.shape_cast %12 : vector<1x128x128xbf16> to vector<128x128xbf16>
    %cst_13 = arith.constant dense<0.000000e+00> : vector<256x128xf32>
    %14 = tpu.matmul %9, %11, %cst_13 {dimension_numbers = #tpu.dot_dimension_numbers<[1], [1], [0], [0], [0, 0, 1, 0], [], []>} : vector<256x128xbf16>, vector<128x128xbf16>, vector<256x128xf32> -> vector<256x128xf32>
    %cst_14 = arith.constant 2.500000e-01 : f32
    %15 = vector.broadcast %cst_14 : f32 to vector<256x128xf32>
    %16 = arith.mulf %14, %15 : vector<256x128xf32>
    %17 = tpu.iota {dimensions = array<i32: 1>} : vector<256x128xi32>
    %c110_i32 = arith.constant 110 : i32
    %18 = vector.broadcast %c110_i32 : i32 to vector<256x128xi32>
    %19 = arith.cmpi slt, %17, %18 : vector<256x128xi32>
    %cst_15 = arith.constant -1.000000e+30 : f32
    %20 = vector.broadcast %cst_15 : f32 to vector<256x128xf32>
    %21 = arith.select %19, %16, %20 : vector<256x128xi1>, vector<256x128xf32>
    %cst_16 = arith.constant dense<0xFF800000> : vector<256xf32>
    %22 = vector.multi_reduction <maximumf>, %21, %cst_16 [1] : vector<256x128xf32> to vector<256xf32>
    %23 = vector.shape_cast %22 : vector<256xf32> to vector<256x1xf32>
    %24 = vector.broadcast %23 : vector<256x1xf32> to vector<256x128xf32>
    %25 = arith.subf %21, %24 : vector<256x128xf32>
    %26 = math.exp %25 : vector<256x128xf32>
    %cst_17 = arith.constant dense<0.000000e+00> : vector<256xf32>
    %27 = vector.multi_reduction <add>, %26, %cst_17 [1] : vector<256x128xf32> to vector<256xf32>
    %28 = vector.shape_cast %27 : vector<256xf32> to vector<256x1xf32>
    %29 = tpu.reciprocal %28 {approx = true} : vector<256x1xf32> -> vector<256x1xf32>
    %30 = vector.broadcast %29 : vector<256x1xf32> to vector<256x128xf32>
    %31 = arith.mulf %26, %30 : vector<256x128xf32>
    %32 = arith.truncf %31 : vector<256x128xf32> to vector<256x128xbf16>
    %cst_18 = arith.constant dense<0.000000e+00> : vector<256x128xf32>
    %33 = tpu.matmul %32, %13, %cst_18 {dimension_numbers = #tpu.dot_dimension_numbers<[1], [0], [0], [1], [0, 0, 1, 1], [], []>} : vector<256x128xbf16>, vector<128x128xbf16>, vector<256x128xf32> -> vector<256x128xf32>
    %34 = arith.truncf %33 : vector<256x128xf32> to vector<256x128xbf16>
    %c0_19 = arith.constant 0 : index
    %c0_20 = arith.constant 0 : index
    %35 = vector.load %arg7[%c0_19, %c0_20] : memref<128x128xbf16, #tpu.memory_space<vmem>>, vector<128x128xbf16>
    %cst_21 = arith.constant dense<0.000000e+00> : vector<256x128xf32>
    %36 = tpu.matmul %34, %35, %cst_21 {dimension_numbers = #tpu.dot_dimension_numbers<[1], [0], [0], [1], [0, 0, 1, 1], [], []>} : vector<256x128xbf16>, vector<128x128xbf16>, vector<256x128xf32> -> vector<256x128xf32>
    %c0_22 = arith.constant 0 : index
    %c0_23 = arith.constant 0 : index
    %37 = vector.load %arg8[%c0_22, %c0_23] : memref<1x128xf32, #tpu.memory_space<vmem>>, vector<1x128xf32>
    %38 = vector.broadcast %37 : vector<1x128xf32> to vector<256x128xf32>
    %39 = arith.addf %36, %38 : vector<256x128xf32>
    %40 = arith.extf %1 : vector<256x128xbf16> to vector<256x128xf32>
    %41 = arith.addf %39, %40 : vector<256x128xf32>
    %c0_24 = arith.constant 0 : index
    %c0_25 = arith.constant 0 : index
    %c0_26 = arith.constant 0 : index
    %42 = vector.load %arg9[%c0_24, %c0_25, %c0_26] : memref<1x256x128xf32, #tpu.memory_space<vmem>>, vector<1x256x128xf32>
    %43 = vector.shape_cast %42 : vector<1x256x128xf32> to vector<256x128xf32>
    %44 = vector.shape_cast %41 : vector<256x128xf32> to vector<1x256x128xf32>
    tpu.vector_store %arg9[%c0_24, %c0_25, %c0_26], %44 {strides = array<i32>} : memref<1x256x128xf32, #tpu.memory_space<vmem>>, vector<1x256x128xf32>,
    return
  }
  func.func @transform_0(%arg0: i32, %arg1: i32) -> (i32, i32, i32) {
    %c0_i32 = arith.constant 0 : i32
    %c0_i32_0 = arith.constant 0 : i32
    return %arg0, %arg1, %c0_i32 : i32, i32, i32
  }
  func.func @transform_1(%arg0: i32, %arg1: i32) -> (i32, i32) {
    %c0_i32 = arith.constant 0 : i32
    %c0_i32_0 = arith.constant 0 : i32
    %c0_i32_1 = arith.constant 0 : i32
    return %c0_i32, %c0_i32_0 : i32, i32
  }
  func.func @transform_2(%arg0: i32, %arg1: i32) -> (i32, i32) {
    %c0_i32 = arith.constant 0 : i32
    %c0_i32_0 = arith.constant 0 : i32
    %c0_i32_1 = arith.constant 0 : i32
    return %c0_i32, %c0_i32_0 : i32, i32
  }
  func.func @transform_3(%arg0: i32, %arg1: i32) -> (i32, i32, i32) {
    %c0_i32 = arith.constant 0 : i32
    %c0_i32_0 = arith.constant 0 : i32
    %c0_i32_1 = arith.constant 0 : i32
    return %arg0, %c0_i32, %c0_i32_0 : i32, i32, i32
  }
  func.func @transform_4(%arg0: i32, %arg1: i32) -> (i32, i32, i32) {
    %c0_i32 = arith.constant 0 : i32
    %c0_i32_0 = arith.constant 0 : i32
    %c0_i32_1 = arith.constant 0 : i32
    return %arg0, %c0_i32, %c0_i32_0 : i32, i32, i32
  }
  func.func @transform_5(%arg0: i32, %arg1: i32) -> (i32, i32) {
    %c0_i32 = arith.constant 0 : i32
    %c0_i32_0 = arith.constant 0 : i32
    %c0_i32_1 = arith.constant 0 : i32
    return %c0_i32, %c0_i32_0 : i32, i32
  }
  func.func @transform_6(%arg0: i32, %arg1: i32) -> (i32, i32) {
    %c0_i32 = arith.constant 0 : i32
    %c0_i32_0 = arith.constant 0 : i32
    %c0_i32_1 = arith.constant 0 : i32
    return %c0_i32, %c0_i32_0 : i32, i32
  }
  func.func @transform_7(%arg0: i32, %arg1: i32) -> (i32, i32, i32) {
    %c0_i32 = arith.constant 0 : i32
    %c0_i32_0 = arith.constant 0 : i32
    return %arg0, %arg1, %c0_i32 : i32, i32, i32
  }
}

</mosaic_0001>

<bundles_post_ra>
// kernel: tpu_custom_call.1
= control target key start
LH: loop header
LB: loop body
LE: loop exit
PB: predicated region body
PF: predicated region fallthrough
CT: control target
= control target key end

     0   :  { %s3379_s0 = inlined_call_operand.hbm [shape: bf16[2,256,128], index: 0, kind: input, shape index: {}]   ;;  %s3380_s1 = inlined_call_operand.hbm [shape: bf16[128,128], index: 1, kind: input, shape index: {}]   ;;  %s3381_s2 = inlined_call_operand.vmem [shape: f32[1,128], index: 2, kind: input, shape index: {}]   ;;  %s3382_s3 = inlined_call_operand.hbm [shape: bf16[2,128,128], index: 3, kind: input, shape index: {}]   ;;  %s3383_s4 = inlined_call_operand.hbm [shape: bf16[2,128,128], index: 4, kind: input, shape index: {}]   ;;  %s3384_s5 = inlined_call_operand.hbm [shape: bf16[128,128], index: 5, kind: input, shape index: {}]   ;;  %s3385_s6 = inlined_call_operand.vmem [shape: f32[1,128], index: 6, kind: input, shape index: {}]   ;;  %s3386_s7 = inlined_call_operand.hbm [shape: f32[2,256,128], index: 7, kind: output, shape index: {}]  }
   0x1   :  { %3397 = sst [smem:[#allocation22_spill]] %s3379_s0 }
   0x2   :  { %3398 = sst [smem:[#allocation23_spill]] %s3380_s1 }
   0x3   :  { %3399 = sst [smem:[#allocation24_spill]] %s3382_s3 }
   0x4   :  { %12 = vsyncpa [#allocation3], 0 }
   0x5   :  { %14 = vsyncpa [#allocation3 + $0x1], 0 }
   0x6   :  { %15 = vsyncpa [#allocation6], 0 }
   0x7   :  { %16 = vsyncpa [#allocation4], 0 }
   0x8   :  { %18 = vsyncpa [#allocation4 + $0x1], 0  ;;  %s2671_s24 = smov 0   ;;  %s2673_s25 = smov 0  }
   0x9   :  { %s2675_s26 = smov 0   ;;  %s2677_s27 = smov 0  }
   0xa   :  { %s2679_s28 = smov 0   ;;  %s2681_s29 = smov 0  }
   0xb LB: > { %3400 = sst [smem:[#allocation16_spill]] %s2611_s26  ;;  %s36_s30 = sadd.s32 1, %s2619_s28  ;;  %s2623_s29 = sphi %s2681_s29, %s24_s29   ;;  %s2619_s28 = sphi %s2679_s28, %s3422_s28   ;;  %s2615_s27 = sphi %s2677_s27, %s3421_s27   ;;  %s2611_s26 = sphi %s2675_s26, %s3420_s26   ;;  %s2607_s25 = sphi %s2673_s25, %s3424_s25   ;;  %s2603_s24 = sphi %s2671_s24, %s3423_s24  }
   0xc   : > { %3401 = sst [smem:[#allocation17_spill]] %s2619_s28  ;;  %s45_s8 = sadd.s32 1, %s2611_s26 }
   0xd   : > { %3402 = sst [smem:[#allocation18_spill]] %s2623_s29  ;;  %p38_p0 = scmp.ge.s32.totalorder %s36_s30, 2 }
   0xe   : > { %p52_p1 = scmp.ne.s32.totalorder %s2611_s26, %s2607_s25  ;;  %p53_p2 = scmp.eq.s32.totalorder %s2623_s29, 0 }
   0xf   : > { %s3426_s30 = smov (%p38_p0, %s36_s30), 0  ;;  %p1878_p4 = scmp.ge.s32.totalorder %s2623_s29, 2 }
  0x10   : > { %3403 = sst [smem:[#allocation19_spill]] %s3426_s30  ;;  %p2711_p3 = por %p53_p2, %p52_p1 }
  0x11   : > { %s40_s10 = ssub.s32 %s2619_s28, %s3426_s30  ;;  %p2191_p6 = scmp.lt.s32.totalorder %s2623_s29, 2 }
  0x12   : > { %p43_p5 = scmp.eq.s32.totalorder %s40_s10, 0  ;;  %s280_s11 = sand.u32 1, %s2623_s29  }
  0x13   : > { %s282_s12 = sand.u32 1, %s2611_s26   ;;  %s2092_s15 = sshll.u32 %s2619_s28, 7 }
  0x14   : > { %s2722_s13 = scalar_select %p43_p5, %s2611_s26, %s45_s8  }
  0x15   : > { %s1879_s14 = sshll.u32 %s282_s12, 7  ;;  %s3406_s0 = sld [smem:[#allocation22_spill]] }
  0x16   : > { %3405 = sst [smem:[#allocation20_spill]] %s2722_s13  ;;  %s284_s19 = scalar_lea.vmem [#allocation2], %s1879_s14 }
  0x17   : > { %s294_s20 = sshll.u32 %s284_s19, 4  ;;  %p2730_p7 = pnand %p2191_p6, %p2711_p3  ;;  %s295_s20 = int_to_ptr.vmem [resolvable:$true] %s294_s20 }
  0x18   : > { %s2734_s23 = sshll.u32 %s282_s12, 6  ;;  %s2736_s8 = scalar_lea.sflag [#allocation3], %s280_s11 }
  0x19   : > { %s3387_s10 = smov 64   ;;  %s3389_s14 = smov 4  }
  0x1a   : > { %s1874_s9 = sadd.s32 4294967294, %s2623_s29   ;;  %p58_p8 = scmp.ne.s32.totalorder %s2607_s25, %s2603_s24 }
  0x1b   : > { %s291_s18 = scalar_lea.hbm %s3406_s0, %s2092_s15  ;;  %s2745_s15 = sadd.s32 4294967295, %s2623_s29  }
  0x1c   : > { %s292_s21 = sshll.u32 %s291_s18, 4  ;;  %p59_p9 = scmp.eq.s32.totalorder %s2745_s15, 0  ;;  %s293_s21 = int_to_ptr.hbm [resolvable:$true] %s292_s21 }
  0x1d   : > { %2178 = dma.hbm_to_vmem [thread:$0]  (!%p2730_p7), %s293_s21, 2048, %s295_s20, %s2736_s8, %s3387_s10, %s3387_s10, %s3389_s14  }
  0x1e   : > { %p220_p10 = scmp.eq.s32.totalorder %s2745_s15, 1  ;;  %p226_p11 = scmp.eq.s32.totalorder %s1874_s9, 1 }
  0x1f   : > { %p2754_p12 = por %p59_p9, %p58_p8  ;;  %p1875_p13 = scmp.ge.s32.totalorder %s2623_s29, 1 }
  0x20   : > { %p2762_p0 = por %p220_p10, %p52_p1  ;;  %p2766_p2 = por %p226_p11, %p58_p8 }
  0x21   : > { %p233_p3 = scmp.lt.s32.totalorder %s2623_s29, 3  ;;  %s3412_s1 = sld [smem:[#allocation23_spill]] }
  0x22   : > { %s3410_s16 = scalar_select %p2766_p2, 1, 0 }
  0x23   : > { %p2774_p5 = pnand %p1875_p13, %p233_p3  ;;  %s2627_s21 = smov [#allocation5]  }
  0x24   : > { %3411 = sst [smem:[#allocation21_spill]] %s3410_s16  ;;  %s246_s9 = sshll.u32 %s2627_s21, 4  ;;  %s247_s9 = int_to_ptr.vmem [resolvable:$true] %s246_s9 }
  0x25   : > { %p2168_p1 = pneg %p2774_p5  ;;  %s2093_s10 = sshll.u32 %s2619_s28, 6 }
  0x26   : > { %s308_s14 = scalar_lea.vmem [#allocation7], %s2734_s23  ;;  %s3414_s3 = sld [smem:[#allocation24_spill]] }
  0x27   : > { %s244_s19 = sshll.u32 %s3412_s1, 4  ;;  %s316_s0 = sshll.u32 %s308_s14, 4  ;;  %s245_s19 = int_to_ptr.hbm [resolvable:$true] %s244_s19  ;;  %s317_s0 = int_to_ptr.vmem [resolvable:$true] %s316_s0 }
  0x28   : > { %p2169_p6 = pnand %p2168_p1, %p59_p9  ;;  %s3415_s13 = smov 4  }
  0x29   : > { %s3416_s21 = smov 64   ;;  %s261_s26 = sshll.u32 %s3384_s5, 4  ;;  %s262_s26 = int_to_ptr.hbm [resolvable:$true] %s261_s26 }
  0x2a   : > { %2171 = dma.hbm_to_vmem [thread:$0]  (!%p2169_p6), %s245_s19, 1024, %s247_s9, [#allocation6], %s3416_s21, %s3416_s21, %s3415_s13  }
  0x2b   : > { %s2628_s17 = smov [#allocation9]   ;;  %s335_s19 = scalar_lea.hbm %s3383_s4, %s2093_s10 }
  0x2c   : > { %s313_s1 = scalar_lea.hbm %s3414_s3, %s2093_s10  ;;  %s330_s9 = scalar_lea.vmem [#allocation8], %s2734_s23 }
  0x2d   : > { %s314_s30 = sshll.u32 %s313_s1, 4  ;;  %s263_s1 = sshll.u32 %s2628_s17, 4  ;;  %s315_s30 = int_to_ptr.hbm [resolvable:$true] %s314_s30  ;;  %s264_s1 = int_to_ptr.vmem [resolvable:$true] %s263_s1 }
  0x2e   : > { %2181 = dma.hbm_to_vmem [thread:$0]  (!%p2730_p7), %s315_s30, 1024, %s317_s0, %s2736_s8, %s3416_s21, %s3416_s21, %s3415_s13  }
  0x2f   : > { %2174 = dma.hbm_to_vmem [thread:$0]  (!%p2169_p6), %s262_s26, 1024, %s264_s1, [#allocation6], %s3416_s21, %s3416_s21, %s3415_s13  }
  0x30   : > { %s338_s29 = sshll.u32 %s330_s9, 4  ;;  %s336_s16 = sshll.u32 %s335_s19, 4  ;;  %s339_s29 = int_to_ptr.vmem [resolvable:$true] %s338_s29  ;;  %s337_s16 = int_to_ptr.hbm [resolvable:$true] %s336_s16 }
  0x31   : > { %2184 = dma.hbm_to_vmem [thread:$0]  (!%p2730_p7), %s337_s16, 1024, %s339_s29, %s2736_s8, %s3416_s21, %s3416_s21, %s3415_s13  }
  0x32   : > { %350 = sbr.rel (%p2774_p5) target bundleno = 1463 (0x5b7), region = 48  ;;  %s352_s0 = sand.u32 (!%p2774_p5), 1, %s2745_s15  }
  0x33   : > { %s2816_s26 = sand.u32 (!%p2774_p5), 1, %s2607_s25   ;;  %s353_s28 = scalar_lea.sflag (!%p2774_p5), [#allocation3], %s352_s0 }
  0x34   : > { %s1889_s3 = sshll.u32 (!%p2774_p5), %s2816_s26, 7 }
  0x35   : > { %s2819_s30 = scalar_lea.vmem (!%p2774_p5), [#allocation2], %s1889_s3 }
  0x37   : > { %2582 = dma.done.wait (%p2754_p12), %s353_s28, 2048  }
  0x38   : > { %2584 = vsyncadd (%p2754_p12), %s353_s28, 4294965248 }
  0x39   : > { %2586 = dma.done.wait (%p59_p9), [#allocation6], 1024  }
  0x3a   : > { %2588 = vsyncadd (%p59_p9), [#allocation6], 4294966272  ;;  %s1891_s29 = sshll.u32 %s2816_s26, 6 }
  0x3b   : > { %s2830_s13 = scalar_lea.vmem [#allocation7], %s1891_s29 }
  0x3c   : > { %2590 = dma.done.wait (%p2754_p12), %s353_s28, 2048  }
  0x3d   : > { %2592 = vsyncadd (%p2754_p12), %s353_s28, 4294965248  ;;  %s2836_s22 = scalar_lea.vmem [#allocation8], %s1891_s29 }
  0x3e   : > { %2594 = dma.done.wait (%p59_p9), [#allocation6], 1024  }
  0x3f   : > { %2596 = vsyncadd (%p59_p9), [#allocation6], 4294966272  ;;  %v2118_v0 = vld [vmem:[#allocation5 + $0x38] sm:$0xff]  ;;  %v2117_v1 = vld [vmem:[#allocation5 + $0x30] sm:$0xff]  ;;  %s1894_s11 = sshll.u32 %s2816_s26, 8  ;;  %s2143_s20 = sshll.u32 %s2615_s27, 8 }
  0x40   : > { %626 = vmatpush.bf16.msra.mxu0 %v2118_v0  ;;  %v2126_v2 = vld [vmem:[%s2830_s13 + $0x38] sm:$0xff]  ;;  %v2116_v3 = vld [vmem:[#allocation5 + $0x28] sm:$0xff]  ;;  %v2115_v4 = vld [vmem:[#allocation5 + $0x20] sm:$0xff]  ;;  %s3237_s16 = scalar_lea.vmem [#allocation10], %s1894_s11  ;;  %s1723_s17 = scalar_lea.hbm %s3386_s7, %s2143_s20 }
  0x41   : > { %2144 = vmatpush.bf16.xpose.msra.mxu1 %v2126_v2  ;;  %v2114_v5 = vld [vmem:[#allocation5 + $0x18] sm:$0xff]  ;;  %v2113_v6 = vld [vmem:[#allocation5 + $0x10] sm:$0xff]  ;;  %v2112_v7 = vld [vmem:[#allocation5 + $0x8] sm:$0xff]  ;;  %s1724_s1 = sshll.u32 %s3237_s16, 4  ;;  %s1726_s18 = sshll.u32 %s1723_s17, 4  ;;  %s1725_s1 = int_to_ptr.vmem [resolvable:$true] %s1724_s1  ;;  %s1727_s18 = int_to_ptr.hbm [resolvable:$true] %s1726_s18 }
  0x42   : > { %v2111_v8 = vld [vmem:[#allocation5] sm:$0xff]  ;;  %v2125_v10 = vld [vmem:[%s2830_s13 + $0x30] sm:$0xff]  ;;  %v2096_v11 = vld [vmem:[%s2819_s30 + $0x8] sm:$0xff]  ;;  %s1710_s19 = scalar_lea.sflag [#allocation4], %s2816_s26  ;;  %s2543_s9 = sshra.s32 %s1727_s18, 4  ;;  %s2544_s9 = int_to_ptr.hbm [resolvable:$true] %s2543_s9 }
  0x43   : > { %v2095_v9 = vld [vmem:[%s2819_s30] sm:$0xff]  ;;  %v2097_v12 = vld [vmem:[%s2819_s30 + $0x10] sm:$0xff]  ;;  %v2124_v13 = vld [vmem:[%s2830_s13 + $0x28] sm:$0xff]  ;;  %s2545_s27 = scalar_lea.hbm %s2544_s9, 256  ;;  %s2549_s28 = scalar_lea.hbm %s3386_s7, 512 }
  0x44   : > { %627 = vmatpush.bf16.msra.mxu0 %v2117_v1  ;;  %v2098_v14 = vld [vmem:[%s2819_s30 + $0x18] sm:$0xff]  ;;  %v2099_v15 = vld [vmem:[%s2819_s30 + $0x20] sm:$0xff]  ;;  %v2100_v17 = vld [vmem:[%s2819_s30 + $0x28] sm:$0xff]  ;;  %p2546_p7 = scmp.ne.s32.totalorder %s2544_s9, %s2545_s27  ;;  %p2550_p10 = scmp.lt.s32.totalorder %s2544_s9, %s3386_s7 }
  0x45   : > { %v2123_v16 = vld [vmem:[%s2830_s13 + $0x20] sm:$0xff]  ;;  %v2122_v18 = vld [vmem:[%s2830_s13 + $0x18] sm:$0xff]  ;;  %v2101_v19 = vld [vmem:[%s2819_s30 + $0x30] sm:$0xff]  ;;  %p2551_p11 = scmp.lt.s32.totalorder %s2549_s28, %s2545_s27 }
  0x46   : > { %v2121_v20 = vld [vmem:[%s2830_s13 + $0x10] sm:$0xff]  ;;  %v2120_v21 = vld [vmem:[%s2830_s13 + $0x8] sm:$0xff]  ;;  %v2102_v22 = vld [vmem:[%s2819_s30 + $0x38] sm:$0xff]  ;;  %p2547_p8 = pnand %p2546_p7, %p2762_p0 }
  0x47   : > { %v2119_v23 = vld [vmem:[%s2830_s13] sm:$0xff]  ;;  %v2104_v33 = vld [vmem:[%s2819_s30 + $0x48] sm:$0xff]  ;;  %v2105_v41 = vld [vmem:[%s2819_s30 + $0x50] sm:$0xff]  ;;  %p2552_p12 = por %p2551_p11, %p2550_p10 }
  0x48   : > { %628 = vmatpush.bf16.msra.mxu0 %v2116_v3  ;;  %v2103_v24 = vld [vmem:[%s2819_s30 + $0x40] sm:$0xff]  ;;  %v2106_v49 = vld [vmem:[%s2819_s30 + $0x58] sm:$0xff]  ;;  %v2108_v1 = vld [vmem:[%s2819_s30 + $0x68] sm:$0xff]  ;;  %p2548_p9 = pneg %p2547_p8 }
  0x49   : > { %2145 = vmatpush.bf16.xpose.msra.mxu1 %v2125_v10  ;;  %v2862_v26 = vld [vmem:[%s3381_s2] ss:$0 sm:$0xff] }
  0x4a   : > { %v2107_v57 = vld [vmem:[%s2819_s30 + $0x60] sm:$0xff]  ;;  %p2553_p13 = pnand %p2552_p12, %p2548_p9 }
  0x4c   : > { %629 = vmatpush.bf16.msra.mxu0 %v2115_v4 }
  0x50   : > { %630 = vmatpush.bf16.msra.mxu0 %v2114_v5 }
  0x51   : > { %2146 = vmatpush.bf16.xpose.msra.mxu1 %v2124_v13 }
  0x54   : > { %631 = vmatpush.bf16.msra.mxu0 %v2113_v6 }
  0x58   : > { %632 = vmatpush.bf16.msra.mxu0 %v2112_v7 }
  0x59   : > { %2147 = vmatpush.bf16.xpose.msra.mxu1 %v2123_v16 }
  0x5c   : > { %633 = vmatpush.bf16.msra.mxu0 %v2111_v8 }
  0x5f   : > { %634 = vmatmul.bf16.vlgmr.msra.gmra.mxu0 %v2095_v9  ;;  %v2109_v9 = vld [vmem:[%s2819_s30 + $0x70] sm:$0xff] }
  0x60   : > { %843 = vmatpush.bf16.xpose.msrb.mxu0 %v2126_v2 }
  0x61   : > { %2148 = vmatpush.bf16.xpose.msra.mxu1 %v2122_v18 }
  0x68   : > { %844 = vmatpush.bf16.xpose.msrb.mxu0 %v2125_v10 }
  0x69   : > { %2149 = vmatpush.bf16.xpose.msra.mxu1 %v2121_v20 }
  0x6f   : > { %639 = vmatmul.bf16.gmra.mxu0 %v2096_v11 }
  0x70   : > { %845 = vmatpush.bf16.xpose.msrb.mxu0 %v2124_v13 }
  0x71   : > { %2150 = vmatpush.bf16.xpose.msra.mxu1 %v2120_v21 }
  0x78   : > { %846 = vmatpush.bf16.xpose.msrb.mxu0 %v2123_v16 }
  0x79   : > { %2151 = vmatpush.bf16.xpose.msra.mxu1 %v2119_v23 }
  0x7f   : > { %644 = vmatmul.bf16.gmra.mxu0 %v2097_v12 }
  0x80   : > { %847 = vmatpush.bf16.xpose.msrb.mxu0 %v2122_v18 }
  0x88   : > { %848 = vmatpush.bf16.xpose.msrb.mxu0 %v2121_v20 }
  0x8f   : > { %649 = vmatmul.bf16.gmra.mxu0 %v2098_v14 }
  0x90   : > { %849 = vmatpush.bf16.xpose.msrb.mxu0 %v2120_v21 }
  0x98   : > { %850 = vmatpush.bf16.xpose.msrb.mxu0 %v2119_v23 }
  0x9f   : > { %654 = vmatmul.bf16.gmra.mxu0 %v2099_v15 }
  0xaf   : > { %659 = vmatmul.bf16.gmra.mxu0 %v2100_v17  ;;  %v2110_v17 = vld [vmem:[%s2819_s30 + $0x78] sm:$0xff] }
  0xbf   : > { %664 = vmatmul.bf16.gmra.mxu0 %v2101_v19 }
  0xcf   : > { %669 = vmatmul.bf16.gmra.mxu0 %v2102_v22 }
  0xdc   : > { %v635_v25 = vpop.f32.mrf.mxu0 }
  0xdd   : > { %v636_v27 = vadd.f32 %v2862_v26, %v635_v25 }
  0xdf   : > { %674 = vmatmul.bf16.gmra.mxu0 %v2103_v24  ;;  %v715_v30 = vmax.f32 %v636_v27, 0.0 }
  0xe4   : > { %v637_v28 = vpop.f32.mrf.mxu0 }
  0xe5   : > { %v638_v29 = vadd.f32 %v2862_v26, %v637_v28 }
  0xe7   : > { %v716_v31 = vmax.f32 %v638_v29, 0.0 }
  0xe9   : > { %v2866_v32 = vpack.c.bf16 %v716_v31, %v715_v30 }
  0xec   : > { %v640_v34 = vpop.f32.mrf.mxu0 }
  0xed   : > { %v641_v35 = vadd.f32 %v2862_v26, %v640_v34 }
  0xef   : > { %679 = vmatmul.bf16.gmra.mxu0 %v2104_v33  ;;  %v717_v38 = vmax.f32 %v641_v35, 0.0  ;;  %v964_v35 = vlaneseq }
  0xf4   : > { %v642_v36 = vpop.f32.mrf.mxu0 }
  0xf5   : > { %v643_v37 = vadd.f32 %v2862_v26, %v642_v36 }
  0xf7   : > { %v718_v39 = vmax.f32 %v643_v37, 0.0 }
  0xf9   : > { %v748_v40 = vpack.c.bf16 %v718_v39, %v717_v38  ;;  %v2893_v38 = vand.u32 127, %v964_v35 }
  0xfb   : > { %856 = vmatmul.bf16.vlgmr.msra.gmra.mxu1 %v748_v40  ;;  %vm966_vm0 = vcmp.lt.s32.totalorder %v2893_v38, 110 }
  0xfc   : > { %v645_v42 = vpop.f32.mrf.mxu0 }
  0xfd   : > { %v646_v43 = vadd.f32 %v2862_v26, %v645_v42 }
  0xff   : > { %684 = vmatmul.bf16.gmra.mxu0 %v2105_v41  ;;  %v719_v46 = vmax.f32 %v646_v43, 0.0 }
 0x104   : > { %v647_v44 = vpop.f32.mrf.mxu0 }
 0x105   : > { %v648_v45 = vadd.f32 %v2862_v26, %v647_v44 }
 0x107   : > { %v720_v47 = vmax.f32 %v648_v45, 0.0 }
 0x109   : > { %v749_v48 = vpack.c.bf16 %v720_v47, %v719_v46 }
 0x10b   : > { %861 = vmatmul.bf16.gmra.mxu1 %v749_v48 }
 0x10c   : > { %v650_v50 = vpop.f32.mrf.mxu0 }
 0x10d   : > { %v651_v51 = vadd.f32 %v2862_v26, %v650_v50 }
 0x10f   : > { %689 = vmatmul.bf16.gmra.mxu0 %v2106_v49  ;;  %v721_v54 = vmax.f32 %v651_v51, 0.0 }
 0x114   : > { %v652_v52 = vpop.f32.mrf.mxu0 }
 0x115   : > { %v653_v53 = vadd.f32 %v2862_v26, %v652_v52 }
 0x117   : > { %v722_v55 = vmax.f32 %v653_v53, 0.0 }
 0x119   : > { %v750_v56 = vpack.c.bf16 %v722_v55, %v721_v54 }
 0x11b   : > { %866 = vmatmul.bf16.gmra.mxu1 %v750_v56 }
 0x11c   : > { %v655_v58 = vpop.f32.mrf.mxu0 }
 0x11d   : > { %v656_v59 = vadd.f32 %v2862_v26, %v655_v58 }
 0x11f   : > { %694 = vmatmul.bf16.gmra.mxu0 %v2107_v57  ;;  %v723_v62 = vmax.f32 %v656_v59, 0.0 }
 0x124   : > { %v657_v60 = vpop.f32.mrf.mxu0 }
 0x125   : > { %v658_v61 = vadd.f32 %v2862_v26, %v657_v60 }
 0x127   : > { %v724_v63 = vmax.f32 %v658_v61, 0.0 }
 0x129   : > { %v751_v0 = vpack.c.bf16 %v724_v63, %v723_v62 }
 0x12b   : > { %871 = vmatmul.bf16.gmra.mxu1 %v751_v0 }
 0x12c   : > { %v660_v2 = vpop.f32.mrf.mxu0 }
 0x12d   : > { %v661_v3 = vadd.f32 %v2862_v26, %v660_v2 }
 0x12f   : > { %699 = vmatmul.bf16.gmra.mxu0 %v2108_v1  ;;  %v725_v6 = vmax.f32 %v661_v3, 0.0 }
 0x134   : > { %v662_v4 = vpop.f32.mrf.mxu0 }
 0x135   : > { %v663_v5 = vadd.f32 %v2862_v26, %v662_v4 }
 0x137   : > { %v726_v7 = vmax.f32 %v663_v5, 0.0 }
 0x139   : > { %v752_v8 = vpack.c.bf16 %v726_v7, %v725_v6 }
 0x13b   : > { %876 = vmatmul.bf16.gmra.mxu1 %v752_v8 }
 0x13c   : > { %v665_v10 = vpop.f32.mrf.mxu0 }
 0x13d   : > { %v666_v11 = vadd.f32 %v2862_v26, %v665_v10 }
 0x13f   : > { %704 = vmatmul.bf16.gmra.mxu0 %v2109_v9  ;;  %v727_v14 = vmax.f32 %v666_v11, 0.0 }
 0x144   : > { %v667_v12 = vpop.f32.mrf.mxu0 }
 0x145   : > { %v668_v13 = vadd.f32 %v2862_v26, %v667_v12 }
 0x147   : > { %v728_v15 = vmax.f32 %v668_v13, 0.0 }
 0x149   : > { %v753_v16 = vpack.c.bf16 %v728_v15, %v727_v14 }
 0x14b   : > { %881 = vmatmul.bf16.gmra.mxu1 %v753_v16 }
 0x14c   : > { %v670_v18 = vpop.f32.mrf.mxu0 }
 0x14d   : > { %v671_v19 = vadd.f32 %v2862_v26, %v670_v18 }
 0x14f   : > { %709 = vmatmul.bf16.gmra.mxu0 %v2110_v17  ;;  %v729_v22 = vmax.f32 %v671_v19, 0.0 }
 0x154   : > { %v672_v20 = vpop.f32.mrf.mxu0 }
 0x155   : > { %v673_v21 = vadd.f32 %v2862_v26, %v672_v20 }
 0x157   : > { %v730_v23 = vmax.f32 %v673_v21, 0.0 }
 0x159   : > { %v754_v24 = vpack.c.bf16 %v730_v23, %v729_v22 }
 0x15b   : > { %886 = vmatmul.bf16.gmra.mxu1 %v754_v24 }
 0x15c   : > { %v675_v25 = vpop.f32.mrf.mxu0 }
 0x15d   : > { %v676_v27 = vadd.f32 %v2862_v26, %v675_v25 }
 0x15f   : > { %851 = vmatmul.bf16.vlgmr.msrb.gmra.mxu0 %v2866_v32  ;;  %v731_v30 = vmax.f32 %v676_v27, 0.0 }
 0x164   : > { %v677_v28 = vpop.f32.mrf.mxu0 }
 0x165   : > { %v678_v29 = vadd.f32 %v2862_v26, %v677_v28 }
 0x167   : > { %v732_v31 = vmax.f32 %v678_v29, 0.0 }
 0x169   : > { %v755_v33 = vpack.c.bf16 %v732_v31, %v731_v30 }
 0x16b   : > { %891 = vmatmul.bf16.gmra.mxu1 %v755_v33 }
 0x16c   : > { %v680_v34 = vpop.f32.mrf.mxu0 }
 0x16d   : > { %v681_v36 = vadd.f32 %v2862_v26, %v680_v34 }
 0x16f   : > { %v733_v40 = vmax.f32 %v681_v36, 0.0 }
 0x174   : > { %v682_v37 = vpop.f32.mrf.mxu0 }
 0x175   : > { %v683_v39 = vadd.f32 %v2862_v26, %v682_v37 }
 0x177   : > { %v734_v32 = vmax.f32 %v683_v39, 0.0 }
 0x178   : > { %v857_v41 = vpop.f32.mrf.mxu1 }
 0x179   : > { %v934_v42 = vmul.f32 0.25, %v857_v41  ;;  %v756_v43 = vpack.c.bf16 %v734_v32, %v733_v40 }
 0x17b   : > { %896 = vmatmul.bf16.gmra.mxu1 %v756_v43  ;;  %v2899_v44 = vsel %vm966_vm0, %v934_v42, -1e+30 }
 0x17c   : > { %v685_v45 = vpop.f32.mrf.mxu0  ;;  %1003 = vmax.xlane.f32.xlu1 %v2899_v44 }
 0x17d   : > { %v686_v48 = vadd.f32 %v2862_v26, %v685_v45 }
 0x17f   : > { %v735_v52 = vmax.f32 %v686_v48, 0.0 }
 0x180   : > { %v859_v46 = vpop.f32.mrf.mxu1 }
 0x181   : > { %v935_v47 = vmul.f32 0.25, %v859_v46 }
 0x183   : > { %v2905_v49 = vsel %vm966_vm0, %v935_v47, -1e+30 }
 0x184   : > { %v687_v50 = vpop.f32.mrf.mxu0  ;;  %1005 = vmax.xlane.f32.xlu1 %v2905_v49 }
 0x185   : > { %v688_v51 = vadd.f32 %v2862_v26, %v687_v50 }
 0x187   : > { %v736_v53 = vmax.f32 %v688_v51, 0.0 }
 0x188   : > { %v862_v54 = vpop.f32.mrf.mxu1 }
 0x189   : > { %v936_v55 = vmul.f32 0.25, %v862_v54  ;;  %v757_v56 = vpack.c.bf16 %v736_v53, %v735_v52 }
 0x18b   : > { %901 = vmatmul.bf16.gmra.mxu1 %v757_v56  ;;  %v2911_v57 = vsel %vm966_vm0, %v936_v55, -1e+30 }
 0x18c   : > { %v690_v58 = vpop.f32.mrf.mxu0  ;;  %1007 = vmax.xlane.f32.xlu2 %v2911_v57 }
 0x18d   : > { %v691_v61 = vadd.f32 %v2862_v26, %v690_v58 }
 0x18f   : > { %v737_v1 = vmax.f32 %v691_v61, 0.0 }
 0x190   : > { %v864_v59 = vpop.f32.mrf.mxu1 }
 0x191   : > { %v937_v60 = vmul.f32 0.25, %v864_v59 }
 0x193   : > { %v2917_v62 = vsel %vm966_vm0, %v937_v60, -1e+30 }
 0x194   : > { %v692_v63 = vpop.f32.mrf.mxu0  ;;  %1009 = vmax.xlane.f32.xlu2 %v2917_v62 }
 0x195   : > { %v693_v0 = vadd.f32 %v2862_v26, %v692_v63 }
 0x197   : > { %v738_v2 = vmax.f32 %v693_v0, 0.0 }
 0x198   : > { %v867_v3 = vpop.f32.mrf.mxu1 }
 0x199   : > { %v758_v4 = vpack.c.bf16 %v738_v2, %v737_v1  ;;  %v938_v50 = vmul.f32 0.25, %v867_v3 }
 0x19b   : > { %906 = vmatmul.bf16.gmra.mxu1 %v758_v4  ;;  %v973_v52 = vsel %vm966_vm0, %v938_v50, -1e+30 }
 0x19c   : > { %v695_v5 = vpop.f32.mrf.mxu0 }
 0x19d   : > { %v696_v8 = vadd.f32 %v2862_v26, %v695_v5 }
 0x19f   : > { %v739_v12 = vmax.f32 %v696_v8, 0.0 }
 0x1a0   : > { %v869_v6 = vpop.f32.mrf.mxu1 }
 0x1a1   : > { %v939_v7 = vmul.f32 0.25, %v869_v6 }
 0x1a3   : > { %v2924_v9 = vsel %vm966_vm0, %v939_v7, -1e+30 }
 0x1a4   : > { %v697_v10 = vpop.f32.mrf.mxu0  ;;  %1013 = vmax.xlane.f32.xlu1 %v2924_v9 }
 0x1a5   : > { %v698_v11 = vadd.f32 %v2862_v26, %v697_v10 }
 0x1a7   : > { %v740_v13 = vmax.f32 %v698_v11, 0.0 }
 0x1a8   : > { %v872_v14 = vpop.f32.mrf.mxu1 }
 0x1a9   : > { %v940_v15 = vmul.f32 0.25, %v872_v14  ;;  %v759_v16 = vpack.c.bf16 %v740_v13, %v739_v12 }
 0x1ab   : > { %911 = vmatmul.bf16.gmra.mxu1 %v759_v16  ;;  %v2930_v17 = vsel %vm966_vm0, %v940_v15, -1e+30 }
 0x1ac   : > { %v700_v18 = vpop.f32.mrf.mxu0  ;;  %1015 = vmax.xlane.f32.xlu1 %v2930_v17 }
 0x1ad   : > { %v701_v19 = vadd.f32 %v2862_v26, %v700_v18 }
 0x1af   : > { %v741_v22 = vmax.f32 %v701_v19, 0.0 }
 0x1b0   : > { %v874_v45 = vpop.f32.mrf.mxu1 }
 0x1b1   : > { %v941_v15 = vmul.f32 0.25, %v874_v45 }
 0x1b4   : > { %v702_v20 = vpop.f32.mrf.mxu0 }
 0x1b5   : > { %v703_v21 = vadd.f32 %v2862_v26, %v702_v20  ;;  %v2971_v20 = vsel %vm966_vm0, %v941_v15, -1e+30 }
 0x1b7   : > { %v742_v23 = vmax.f32 %v703_v21, 0.0 }
 0x1b8   : > { %v877_v51 = vpop.f32.mrf.mxu1 }
 0x1b9   : > { %v760_v24 = vpack.c.bf16 %v742_v23, %v741_v22  ;;  %v942_v23 = vmul.f32 0.25, %v877_v51 }
 0x1bb   : > { %916 = vmatmul.bf16.gmra.mxu1 %v760_v24 }
 0x1bc   : > { %v705_v25 = vpop.f32.mrf.mxu0 }
 0x1bd   : > { %v706_v27 = vadd.f32 %v2862_v26, %v705_v25 }
 0x1bf   : > { %v743_v30 = vmax.f32 %v706_v27, 0.0 }
 0x1c0   : > { %v879_v53 = vpop.f32.mrf.mxu1 }
 0x1c4   : > { %v707_v28 = vpop.f32.mrf.mxu0 }
 0x1c5   : > { %v708_v29 = vadd.f32 %v2862_v26, %v707_v28  ;;  %v2980_v28 = vsel %vm966_vm0, %v942_v23, -1e+30  ;;  %v2127_v23 = vld [vmem:[%s2836_s22] sm:$0xff] }
 0x1c7   : > { %v744_v31 = vmax.f32 %v708_v29, 0.0 }
 0x1c8   : > { %v882_v58 = vpop.f32.mrf.mxu1 }
 0x1c9   : > { %v761_v33 = vpack.c.bf16 %v744_v31, %v743_v30  ;;  %v943_v31 = vmul.f32 0.25, %v879_v53 }
 0x1cb   : > { %921 = vmatmul.bf16.gmra.mxu1 %v761_v33 }
 0x1cc   : > { %v710_v34 = vpop.f32.mrf.mxu0 }
 0x1cd   : > { %v711_v35 = vadd.f32 %v2862_v26, %v710_v34  ;;  %v2988_v34 = vsel %vm966_vm0, %v943_v31, -1e+30 }
 0x1cf   : > { %v745_v39 = vmax.f32 %v711_v35, 0.0 }
 0x1d0   : > { %v884_v0 = vpop.f32.mrf.mxu1 }
 0x1d1   : > { %v945_v2 = vmul.f32 0.25, %v884_v0 }
 0x1d4   : > { %v712_v36 = vpop.f32.mrf.mxu0 }
 0x1d5   : > { %v713_v37 = vadd.f32 %v2862_v26, %v712_v36 }
 0x1d7   : > { %v746_v40 = vmax.f32 %v713_v37, 0.0  ;;  %v944_v37 = vmul.f32 0.25, %v882_v58 }
 0x1d8   : > { %v887_v3 = vpop.f32.mrf.mxu1 }
 0x1d9   : > { %v762_v32 = vpack.c.bf16 %v746_v40, %v745_v39 }
 0x1db   : > { %926 = vmatmul.bf16.gmra.mxu1 %v762_v32 }
 0x1dc   : > { %v852_v41 = vpop.f32.mrf.mxu0 }
 0x1dd   : > { %v932_v42 = vmul.f32 0.25, %v852_v41  ;;  %v2997_v41 = vsel %vm966_vm0, %v944_v37, -1e+30 }
 0x1df   : > { %v967_v43 = vsel %vm966_vm0, %v932_v42, -1e+30 }
 0x1e0   : > { %999 = vmax.xlane.f32.xlu0 %v967_v43  ;;  %v889_v11 = vpop.f32.mrf.mxu1 }
 0x1e4   : > { %v854_v46 = vpop.f32.mrf.mxu0 }
 0x1e5   : > { %v933_v47 = vmul.f32 0.25, %v854_v46 }
 0x1e7   : > { %v968_v48 = vsel %vm966_vm0, %v933_v47, -1e+30 }
 0x1e8   : > { %1001 = vmax.xlane.f32.xlu0 %v968_v48  ;;  %v892_v21 = vpop.f32.mrf.mxu1 }
 0x1e9   : > { %v948_v51 = vmul.f32 0.25, %v892_v21  ;;  %v2128_v21 = vld [vmem:[%s2836_s22 + $0x8] sm:$0xff] }
 0x1ef   : > { %v1004_v26 = vpop.xlane.xlu1 %1003 }
 0x1f0   : > { %1011 = vmax.xlane.f32.xlu0 %v973_v52  ;;  %v1065_v14 = vsub.f32 %v2899_v44, %v1004_v26  ;;  %v894_v30 = vpop.f32.mrf.mxu1 }
 0x1f1   : > { %v949_v53 = vmul.f32 0.25, %v894_v30 }
 0x1f2   : > { %v1099_v16 = vmul.f32 1.442695, %v1065_v14 }
 0x1f7   : > { %v1006_v54 = vpop.xlane.xlu1 %1005 }
 0x1f8   : > { %v1066_v55 = vsub.f32 %v2905_v49, %v1006_v54  ;;  %v2955_v49 = vsel %vm966_vm0, %v945_v2, -1e+30  ;;  %v897_v39 = vpop.f32.mrf.mxu1  ;;  %v2134_v2 = vld [vmem:[%s2836_s22 + $0x38] sm:$0xff] }
 0x1f9   : > { %1351 = vmatpush.bf16.msra.mxu2 %v2134_v2 }
 0x1fa   : > { %v1101_v56 = vmul.f32 1.442695, %v1066_v55  ;;  %v3028_v55 = vsel %vm966_vm0, %v949_v53, -1e+30 }
 0x1fc   : > { %2251 = vpow2.f32 %v1101_v56 }
 0x1ff   : > { %v1008_v59 = vpop.xlane.xlu2 %1007 }
 0x200   : > { %v1067_v60 = vsub.f32 %v2911_v57, %v1008_v59  ;;  %v946_v57 = vmul.f32 0.25, %v887_v3  ;;  %v3004_v46 = vpop.f32.mrf.mxu1  ;;  %v950_v59 = vmul.f32 0.25, %v897_v39 }
 0x202   : > { %v2947_v61 = vpop.eup %2251  ;;  %v1103_v63 = vmul.f32 1.442695, %v1067_v60  ;;  %v2960_v4 = vsel %vm966_vm0, %v946_v57, -1e+30  ;;  %v3036_v0 = vsel %vm966_vm0, %v950_v59, -1e+30 }
 0x203   : > { %1165 = vadd.xlane.f32.xlu1 %v2947_v61  ;;  %v2133_v57 = vld [vmem:[%s2836_s22 + $0x30] sm:$0xff]  ;;  %v951_v59 = vmul.f32 0.25, %v3004_v46 }
 0x204   : > { %2253 = vpow2.f32 %v1103_v63  ;;  %1352 = vmatpush.bf16.msra.mxu2 %v2133_v57 }
 0x207   : > { %v1010_v18 = vpop.xlane.xlu2 %1009 }
 0x208   : > { %v1068_v22 = vsub.f32 %v2917_v62, %v1010_v18 }
 0x20a   : > { %v2950_v1 = vpop.eup %2253  ;;  %v1105_v44 = vmul.f32 1.442695, %v1068_v22 }
 0x20b   : > { %1167 = vadd.xlane.f32.xlu1 %v2950_v1 }
 0x213   : > { %1025 = vmax.xlane.f32.xlu1 %v2955_v49 }
 0x217   : > { %v1014_v24 = vpop.xlane.xlu1 %1013 }
 0x218   : > { %v1070_v36 = vsub.f32 %v2924_v9, %v1014_v24  ;;  %v947_v9 = vmul.f32 0.25, %v889_v11 }
 0x21a   : > { %v1109_v40 = vmul.f32 1.442695, %v1070_v36 }
 0x21b   : > { %1027 = vmax.xlane.f32.xlu1 %v2960_v4 }
 0x21f   : > { %v1016_v35 = vpop.xlane.xlu1 %1015 }
 0x253   : > { %v1000_v5 = vpop.xlane.xlu0 %999 }
 0x254   : > { %v1063_v6 = vsub.f32 %v967_v43, %v1000_v5  ;;  %v1071_v43 = vsub.f32 %v2930_v17, %v1016_v35  ;;  %v3020_v17 = vsel %vm966_vm0, %v948_v51, -1e+30 }
 0x256   : > { %v1095_v7 = vmul.f32 1.442695, %v1063_v6  ;;  %v1111_v45 = vmul.f32 1.442695, %v1071_v43  ;;  %v2132_v6 = vld [vmem:[%s2836_s22 + $0x28] sm:$0xff] }
 0x257   : > { %1353 = vmatpush.bf16.msra.mxu2 %v2132_v6 }
 0x258   : > { %2255 = vpow2.f32 %v1095_v7 }
 0x25b   : > { %v1002_v8 = vpop.xlane.xlu0 %1001 }
 0x25c   : > { %v1064_v10 = vsub.f32 %v968_v48, %v1002_v8  ;;  %v3010_v48 = vsel %vm966_vm0, %v947_v9, -1e+30 }
 0x25e   : > { %v2963_v12 = vpop.eup %2255  ;;  %v1097_v13 = vmul.f32 1.442695, %v1064_v10 }
 0x25f   : > { %1159 = vadd.xlane.f32.xlu2 %v2963_v12 }
 0x260   : > { %2257 = vpow2.f32 %v1097_v13  ;;  %v2130_v13 = vld [vmem:[%s2836_s22 + $0x18] sm:$0xff] }
 0x261   : > { %2259 = vpow2.f32 %v1099_v16  ;;  %v2129_v16 = vld [vmem:[%s2836_s22 + $0x10] sm:$0xff] }
 0x262   : > { %2261 = vpow2.f32 %v1105_v44 }
 0x263   : > { %v1012_v25 = vpop.xlane.xlu0 %1011 }
 0x264   : > { %v1069_v29 = vsub.f32 %v973_v52, %v1012_v25  ;;  %v3022_v52 = vpop.f32.mrf.mxu1 }
 0x266   : > { %v2967_v19 = vpop.eup %2257  ;;  %v1107_v33 = vmul.f32 1.442695, %v1069_v29 }
 0x267   : > { %1017 = vmax.xlane.f32.xlu2 %v2971_v20  ;;  %1161 = vadd.xlane.f32.xlu0 %v2967_v19  ;;  %v2976_v27 = vpop.eup %2259 }
 0x268   : > { %v2984_v62 = vpop.eup %2261  ;;  %2263 = vpow2.f32 %v1107_v33 }
 0x269   : > { %2265 = vpow2.f32 %v1109_v40 }
 0x26a   : > { %2267 = vpow2.f32 %v1111_v45 }
 0x26c   : > { %v3032_v58 = vpop.f32.mrf.mxu1 }
 0x26e   : > { %v2993_v32 = vpop.eup %2263 }
 0x26f   : > { %1019 = vmax.xlane.f32.xlu2 %v2980_v28  ;;  %1163 = vadd.xlane.f32.xlu0 %v2976_v27  ;;  %v3006_v47 = vpop.eup %2265 }
 0x270   : > { %v3016_v26 = vpop.eup %2267 }
 0x276   : > { %v2999_v42 = vpop.xlane.xlu1 %1165 }
 0x277   : > { %1169 = vadd.xlane.f32.xlu2 %v2984_v62  ;;  %1021 = vmax.xlane.f32.xlu0 %v2988_v34 }
 0x27e   : > { %v3014_v50 = vpop.xlane.xlu1 %1167 }
 0x27f   : > { %1023 = vmax.xlane.f32.xlu0 %v2997_v41  ;;  %1171 = vadd.xlane.f32.xlu2 %v2993_v32 }
 0x286   : > { %v1026_v54 = vpop.xlane.xlu1 %1025 }
 0x287   : > { %1173 = vadd.xlane.f32.xlu0 %v3006_v47  ;;  %1029 = vmax.xlane.f32.xlu2 %v3010_v48  ;;  %v1076_v56 = vsub.f32 %v2955_v49, %v1026_v54  ;;  %v3042_v49 = vpop.f32.mrf.mxu1 }
 0x289   : > { %v1121_v60 = vmul.f32 1.442695, %v1076_v56 }
 0x28b   : > { %2269 = vpow2.f32 %v1121_v60 }
 0x28e   : > { %v1028_v63 = vpop.xlane.xlu1 %1027 }
 0x28f   : > { %1175 = vadd.xlane.f32.xlu0 %v3016_v26  ;;  %1031 = vmax.xlane.f32.xlu2 %v3020_v17  ;;  %v1077_v3 = vsub.f32 %v2960_v4, %v1028_v63  ;;  %v909_v8 = vpop.f32.mrf.mxu1  ;;  %v2131_v4 = vld [vmem:[%s2836_s22 + $0x20] sm:$0xff] }
 0x290   : > { %v955_v11 = vmul.f32 0.25, %v909_v8  ;;  %1354 = vmatpush.bf16.msra.mxu2 %v2131_v4 }
 0x291   : > { %v1123_v5 = vmul.f32 1.442695, %v1077_v3  ;;  %v3045_v7 = vpop.eup %2269 }
 0x292   : > { %v3055_v14 = vsel %vm966_vm0, %v955_v11, -1e+30 }
 0x293   : > { %2271 = vpow2.f32 %v1123_v5  ;;  %v3086_v5 = vsel %vm966_vm0, %v951_v59, -1e+30 }
 0x294   : > { %1355 = vmatpush.bf16.msra.mxu2 %v2130_v13 }
 0x297   : > { %1033 = vmax.xlane.f32.xlu0 %v3028_v55  ;;  %v912_v15 = vpop.f32.mrf.mxu1 }
 0x298   : > { %v956_v18 = vmul.f32 0.25, %v912_v15  ;;  %1356 = vmatpush.bf16.msra.mxu2 %v2129_v16 }
 0x299   : > { %v3048_v10 = vpop.eup %2271 }
 0x29a   : > { %v3062_v22 = vsel %vm966_vm0, %v956_v18, -1e+30 }
 0x29c   : > { %1357 = vmatpush.bf16.msra.mxu2 %v2128_v21 }
 0x29f   : > { %1035 = vmax.xlane.f32.xlu0 %v3036_v0 }
 0x2a0   : > { %1358 = vmatpush.bf16.msra.mxu2 %v2127_v23 }
 0x2a7   : > { %1185 = vadd.xlane.f32.xlu0 %v3045_v7 }
 0x2af   : > { %1187 = vadd.xlane.f32.xlu0 %v3048_v10 }
 0x2b7   : > { %1045 = vmax.xlane.f32.xlu0 %v3055_v14 }
 0x2bf   : > { %1047 = vmax.xlane.f32.xlu0 %v3062_v22 }
 0x2d2   : > { %v1160_v44 = vpop.xlane.xlu2 %1159 }
 0x2d3   : > { %2273 = vrcp.f32 %v1160_v44 }
 0x2d9   : > { %v2274_v31 = vpop.eup %2273 }
 0x2da   : > { %v1018_v24 = vpop.xlane.xlu2 %1017  ;;  %v1162_v25 = vpop.xlane.xlu0 %1161  ;;  %v1255_v37 = vmul.f32 %v2274_v31, %v2963_v12 }
 0x2db   : > { %v1072_v29 = vsub.f32 %v2971_v20, %v1018_v24  ;;  %2275 = vrcp.f32 %v1162_v25 }
 0x2dd   : > { %v1113_v30 = vmul.f32 1.442695, %v1072_v29 }
 0x2df   : > { %2277 = vpow2.f32 %v1113_v30 }
 0x2e1   : > { %v2276_v33 = vpop.eup %2275 }
 0x2e2   : > { %v1020_v35 = vpop.xlane.xlu2 %1019  ;;  %v1164_v36 = vpop.xlane.xlu0 %1163  ;;  %v1256_v39 = vmul.f32 %v2276_v33, %v2967_v19 }
 0x2e3   : > { %v1073_v40 = vsub.f32 %v2980_v28, %v1020_v35  ;;  %2279 = vrcp.f32 %v1164_v36 }
 0x2e4   : > { %v1287_v43 = vpack.c.bf16 %v1256_v39, %v1255_v37 }
 0x2e5   : > { %v3070_v9 = vpop.eup %2277  ;;  %v1115_v45 = vmul.f32 1.442695, %v1073_v40 }
 0x2e6   : > { %1177 = vadd.xlane.f32.xlu1 %v3070_v9  ;;  %1359 = vmatmul.bf16.vlgmr.msra.gmra.mxu2 %v1287_v43 }
 0x2e7   : > { %2281 = vpow2.f32 %v1115_v45 }
 0x2e8   : > { %2283 = vrcp.f32 %v2999_v42 }
 0x2e9   : > { %v2280_v12 = vpop.eup %2279 }
 0x2ea   : > { %v1170_v20 = vpop.xlane.xlu2 %1169  ;;  %v1022_v51 = vpop.xlane.xlu0 %1021  ;;  %v1257_v56 = vmul.f32 %v2280_v12, %v2976_v27  ;;  %v952_v27 = vmul.f32 0.25, %v3022_v52  ;;  %v953_v52 = vmul.f32 0.25, %v3032_v58  ;;  %v2142_v12 = vld [vmem:[#allocation9 + $0x38] sm:$0xff] }
 0x2eb   : > { %v1074_v53 = vsub.f32 %v2988_v34, %v1022_v51  ;;  %v914_v58 = vpop.f32.mrf.mxu1  ;;  %1524 = vmatpush.bf16.msra.mxu3 %v2142_v12 }
 0x2ec   : > { %v3097_v11 = vsel %vm966_vm0, %v952_v27, -1e+30 }
 0x2ed   : > { %v3075_v54 = vpop.eup %2281  ;;  %v1117_v19 = vmul.f32 1.442695, %v1074_v53 }
 0x2ee   : > { %1179 = vadd.xlane.f32.xlu1 %v3075_v54  ;;  %v2284_v28 = vpop.eup %2283 }
 0x2ef   : > { %2285 = vpow2.f32 %v1117_v19  ;;  %v1258_v42 = vmul.f32 %v2284_v28, %v2947_v61  ;;  %v2141_v19 = vld [vmem:[#allocation9 + $0x30] sm:$0xff] }
 0x2f0   : > { %2287 = vrcp.f32 %v1170_v20  ;;  %1525 = vmatpush.bf16.msra.mxu3 %v2141_v19 }
 0x2f1   : > { %v1288_v3 = vpack.c.bf16 %v1258_v42, %v1257_v56 }
 0x2f2   : > { %v1172_v60 = vpop.xlane.xlu2 %1171  ;;  %v1024_v63 = vpop.xlane.xlu0 %1023 }
 0x2f3   : > { %v1075_v2 = vsub.f32 %v2997_v41, %v1024_v63  ;;  %v917_v37 = vpop.f32.mrf.mxu1 }
 0x2f5   : > { %v3082_v34 = vpop.eup %2285  ;;  %v1119_v57 = vmul.f32 1.442695, %v1075_v2 }
 0x2f6   : > { %1037 = vmax.xlane.f32.xlu1 %v3086_v5  ;;  %1364 = vmatmul.bf16.gmra.mxu2 %v1288_v3  ;;  %v2288_v6 = vpop.eup %2287 }
 0x2f7   : > { %2289 = vpow2.f32 %v1119_v57  ;;  %1181 = vadd.xlane.f32.xlu2 %v3082_v34 }
 0x2f8   : > { %2291 = vrcp.f32 %v3014_v50  ;;  %v1260_v50 = vmul.f32 %v2288_v6, %v2984_v62  ;;  %v3112_v62 = vsel %vm966_vm0, %v953_v52, -1e+30  ;;  %v2140_v6 = vld [vmem:[#allocation9 + $0x28] sm:$0xff] }
 0x2f9   : > { %1526 = vmatpush.bf16.msra.mxu3 %v2140_v6  ;;  %v2136_v52 = vld [vmem:[#allocation9 + $0x8] sm:$0xff] }
 0x2fa   : > { %v1030_v61 = vpop.xlane.xlu2 %1029  ;;  %v1174_v41 = vpop.xlane.xlu0 %1173 }
 0x2fb   : > { %v1078_v46 = vsub.f32 %v3010_v48, %v1030_v61 }
 0x2fd   : > { %v3093_v8 = vpop.eup %2289  ;;  %v1125_v4 = vmul.f32 1.442695, %v1078_v46 }
 0x2fe   : > { %1039 = vmax.xlane.f32.xlu1 %v3097_v11  ;;  %v2292_v13 = vpop.eup %2291 }
 0x2ff   : > { %2293 = vpow2.f32 %v1125_v4  ;;  %1183 = vadd.xlane.f32.xlu2 %v3093_v8  ;;  %v1259_v16 = vmul.f32 %v2292_v13, %v2950_v1  ;;  %v954_v1 = vmul.f32 0.25, %v3042_v49  ;;  %v957_v49 = vmul.f32 0.25, %v914_v58  ;;  %v2138_v13 = vld [vmem:[#allocation9 + $0x18] sm:$0xff] }
 0x300   : > { %2295 = vrcp.f32 %v1174_v41 }
 0x301   : > { %v1289_v21 = vpack.c.bf16 %v1260_v50, %v1259_v16  ;;  %v3122_v31 = vsel %vm966_vm0, %v954_v1, -1e+30  ;;  %v3132_v20 = vsel %vm966_vm0, %v957_v49, -1e+30  ;;  %v2137_v50 = vld [vmem:[#allocation9 + $0x10] sm:$0xff] }
 0x302   : > { %v1032_v15 = vpop.xlane.xlu2 %1031  ;;  %v3103_v48 = vpop.xlane.xlu0 %1175 }
 0x303   : > { %v1079_v18 = vsub.f32 %v3020_v17, %v1032_v15 }
 0x305   : > { %v3107_v23 = vpop.eup %2293  ;;  %v1127_v44 = vmul.f32 1.442695, %v1079_v18 }
 0x306   : > { %1189 = vadd.xlane.f32.xlu1 %v3107_v23  ;;  %1369 = vmatmul.bf16.gmra.mxu2 %v1289_v21  ;;  %v2296_v25 = vpop.eup %2295 }
 0x307   : > { %2297 = vpow2.f32 %v1127_v44  ;;  %1041 = vmax.xlane.f32.xlu2 %v3112_v62  ;;  %v1262_v35 = vmul.f32 %v2296_v25, %v3006_v47  ;;  %v958_v47 = vmul.f32 0.25, %v917_v37 }
 0x308   : > { %2299 = vrcp.f32 %v1172_v60 }
 0x309   : > { %v3142_v53 = vsel %vm966_vm0, %v958_v47, -1e+30 }
 0x30a   : > { %v1034_v17 = vpop.xlane.xlu0 %1033 }
 0x30b   : > { %v1080_v24 = vsub.f32 %v3028_v55, %v1034_v17 }
 0x30d   : > { %v3117_v29 = vpop.eup %2297  ;;  %v1129_v30 = vmul.f32 1.442695, %v1080_v24 }
 0x30e   : > { %1191 = vadd.xlane.f32.xlu1 %v3117_v29  ;;  %v2300_v33 = vpop.eup %2299 }
 0x30f   : > { %2301 = vpow2.f32 %v1129_v30  ;;  %1043 = vmax.xlane.f32.xlu2 %v3122_v31  ;;  %v1261_v55 = vmul.f32 %v2300_v33, %v2993_v32 }
 0x311   : > { %v1290_v40 = vpack.c.bf16 %v1262_v35, %v1261_v55 }
 0x312   : > { %v1036_v36 = vpop.xlane.xlu0 %1035 }
 0x313   : > { %v1081_v39 = vsub.f32 %v3036_v0, %v1036_v36  ;;  %v919_v0 = vpop.f32.mrf.mxu1 }
 0x314   : > { %v959_v28 = vmul.f32 0.25, %v919_v0 }
 0x315   : > { %v3128_v43 = vpop.eup %2301  ;;  %v1131_v45 = vmul.f32 1.442695, %v1081_v39 }
 0x316   : > { %1049 = vmax.xlane.f32.xlu1 %v3132_v20  ;;  %1374 = vmatmul.bf16.gmra.mxu2 %v1290_v40  ;;  %v3150_v59 = vsel %vm966_vm0, %v959_v28, -1e+30 }
 0x317   : > { %2303 = vpow2.f32 %v1131_v45  ;;  %1193 = vadd.xlane.f32.xlu2 %v3128_v43 }
 0x31a   : > { %v3136_v51 = vpop.xlane.xlu0 %1185 }
 0x31b   : > { %v922_v60 = vpop.f32.mrf.mxu1 }
 0x31c   : > { %v960_v63 = vmul.f32 0.25, %v922_v60 }
 0x31d   : > { %v3138_v32 = vpop.eup %2303 }
 0x31e   : > { %1051 = vmax.xlane.f32.xlu1 %v3142_v53  ;;  %v3156_v57 = vsel %vm966_vm0, %v960_v63, -1e+30 }
 0x31f   : > { %1195 = vadd.xlane.f32.xlu2 %v3138_v32 }
 0x322   : > { %v3146_v56 = vpop.xlane.xlu0 %1187 }
 0x323   : > { %v924_v0 = vpop.f32.mrf.mxu1 }
 0x324   : > { %v961_v63 = vmul.f32 0.25, %v924_v0 }
 0x326   : > { %v3186_v6 = vsel %vm966_vm0, %v961_v63, -1e+30 }
 0x327   : > { %1053 = vmax.xlane.f32.xlu2 %v3150_v59 }
 0x32a   : > { %v1046_v42 = vpop.xlane.xlu0 %1045 }
 0x32b   : > { %v1086_v2 = vsub.f32 %v3055_v14, %v1046_v42  ;;  %v2139_v14 = vld [vmem:[#allocation9 + $0x20] sm:$0xff] }
 0x32c   : > { %1527 = vmatpush.bf16.msra.mxu3 %v2139_v14 }
 0x32d   : > { %v1141_v3 = vmul.f32 1.442695, %v1086_v2 }
 0x32f   : > { %2305 = vpow2.f32 %v1141_v3  ;;  %1055 = vmax.xlane.f32.xlu2 %v3156_v57 }
 0x330   : > { %1528 = vmatpush.bf16.msra.mxu3 %v2138_v13 }
 0x332   : > { %v1048_v27 = vpop.xlane.xlu0 %1047 }
 0x333   : > { %v1087_v61 = vsub.f32 %v3062_v22, %v1048_v27  ;;  %v2135_v22 = vld [vmem:[#allocation9] sm:$0xff] }
 0x334   : > { %1529 = vmatpush.bf16.msra.mxu3 %v2137_v50 }
 0x335   : > { %v3160_v41 = vpop.eup %2305  ;;  %v1143_v46 = vmul.f32 1.442695, %v1087_v61 }
 0x337   : > { %2307 = vpow2.f32 %v1143_v46  ;;  %1205 = vadd.xlane.f32.xlu2 %v3160_v41 }
 0x338   : > { %1530 = vmatpush.bf16.msra.mxu3 %v2136_v52  ;;  %2309 = vrcp.f32 %v3103_v48 }
 0x33c   : > { %1531 = vmatpush.bf16.msra.mxu3 %v2135_v22 }
 0x33d   : > { %v3163_v4 = vpop.eup %2307 }
 0x33e   : > { %v2310_v16 = vpop.eup %2309 }
 0x33f   : > { %1207 = vadd.xlane.f32.xlu2 %v3163_v4  ;;  %v1263_v44 = vmul.f32 %v2310_v16, %v3016_v26 }
 0x359   : > { %v1178_v15 = vpop.xlane.xlu1 %1177 }
 0x35a   : > { %2311 = vrcp.f32 %v1178_v15 }
 0x360   : > { %v2312_v18 = vpop.eup %2311 }
 0x361   : > { %v1180_v21 = vpop.xlane.xlu1 %1179  ;;  %v1264_v58 = vmul.f32 %v2312_v18, %v3070_v9 }
 0x362   : > { %2313 = vrcp.f32 %v1180_v21 }
 0x363   : > { %v1291_v1 = vpack.c.bf16 %v1264_v58, %v1263_v44 }
 0x365   : > { %1379 = vmatmul.bf16.gmra.mxu2 %v1291_v1 }
 0x368   : > { %v2314_v48 = vpop.eup %2313 }
 0x369   : > { %v1038_v17 = vpop.xlane.xlu1 %1037  ;;  %v1360_v24 = vpop.f32.mrf.mxu2  ;;  %v1265_v9 = vmul.f32 %v2314_v48, %v3075_v54 }
 0x36a   : > { %v1082_v25 = vsub.f32 %v3086_v5, %v1038_v17  ;;  %v1182_v30 = vpop.xlane.xlu2 %1181 }
 0x36b   : > { %2315 = vrcp.f32 %v1182_v30 }
 0x36c   : > { %v1133_v33 = vmul.f32 1.442695, %v1082_v25 }
 0x36e   : > { %2317 = vpow2.f32 %v1133_v33 }
 0x371   : > { %v2316_v35 = vpop.eup %2315  ;;  %v1040_v49 = vpop.xlane.xlu1 %1039 }
 0x372   : > { %v1362_v36 = vpop.f32.mrf.mxu2  ;;  %v1083_v55 = vsub.f32 %v3097_v11, %v1040_v49  ;;  %v1184_v26 = vpop.xlane.xlu2 %1183  ;;  %v1266_v39 = vmul.f32 %v2316_v35, %v3082_v34 }
 0x373   : > { %v1440_v37 = vpack.c.bf16 %v1362_v36, %v1360_v24 }
 0x374   : > { %v3173_v40 = vpop.eup %2317  ;;  %v1135_v45 = vmul.f32 1.442695, %v1083_v55  ;;  %v1292_v5 = vpack.c.bf16 %v1266_v39, %v1265_v9 }
 0x375   : > { %1532 = vmatmul.bf16.vlgmr.msra.gmra.mxu3 %v1440_v37  ;;  %1197 = vadd.xlane.f32.xlu0 %v3173_v40 }
 0x376   : > { %2319 = vpow2.f32 %v1135_v45  ;;  %1384 = vmatmul.bf16.gmra.mxu2 %v1292_v5 }
 0x377   : > { %2321 = vrcp.f32 %v1184_v26 }
 0x378   : > { %2323 = vrcp.f32 %v3136_v51 }
 0x379   : > { %v1190_v47 = vpop.xlane.xlu1 %1189 }
 0x37a   : > { %v1365_v11 = vpop.f32.mrf.mxu2  ;;  %v1042_v12 = vpop.xlane.xlu2 %1041 }
 0x37b   : > { %v1084_v54 = vsub.f32 %v3112_v62, %v1042_v12  ;;  %v927_v62 = vpop.f32.mrf.mxu1 }
 0x37c   : > { %v3178_v19 = vpop.eup %2319 }
 0x37d   : > { %v2322_v34 = vpop.eup %2321  ;;  %v1137_v28 = vmul.f32 1.442695, %v1084_v54  ;;  %1199 = vadd.xlane.f32.xlu0 %v3178_v19 }
 0x37e   : > { %v2324_v60 = vpop.eup %2323  ;;  %v1267_v42 = vmul.f32 %v2322_v34, %v3093_v8 }
 0x37f   : > { %2325 = vpow2.f32 %v1137_v28  ;;  %v1268_v61 = vmul.f32 %v2324_v60, %v3045_v7  ;;  %v962_v7 = vmul.f32 0.25, %v927_v62 }
 0x380   : > { %2327 = vrcp.f32 %v1190_v47 }
 0x381   : > { %v1192_v2 = vpop.xlane.xlu1 %1191  ;;  %v1293_v14 = vpack.c.bf16 %v1268_v61, %v1267_v42  ;;  %v3196_v18 = vsel %vm966_vm0, %v962_v7, -1e+30 }
 0x382   : > { %v1367_v3 = vpop.f32.mrf.mxu2  ;;  %v1044_v51 = vpop.xlane.xlu2 %1043 }
 0x383   : > { %v1441_v27 = vpack.c.bf16 %v1367_v3, %v1365_v11  ;;  %v1085_v46 = vsub.f32 %v3122_v31, %v1044_v51  ;;  %v929_v44 = vpop.f32.mrf.mxu1  ;;  %v430_v51 = vld [vmem:[%s2819_s30] sm:$0xff]  }
 0x384   : > { %v963_v1 = vmul.f32 0.25, %v929_v44  ;;  %v1613_v61 = vunpack.c.l.bf16 %v430_v51 }
 0x385   : > { %1537 = vmatmul.bf16.gmra.mxu3 %v1441_v27  ;;  %v3188_v13 = vpop.eup %2325  ;;  %v1139_v50 = vmul.f32 1.442695, %v1085_v46  ;;  %1057 = vmax.xlane.f32.xlu0 %v3186_v6  ;;  %v3232_v27 = vld [vmem:[%s3385_s6] ss:$0 sm:$0xff] }
 0x386   : > { %1201 = vadd.xlane.f32.xlu1 %v3188_v13  ;;  %1389 = vmatmul.bf16.gmra.mxu2 %v1293_v14  ;;  %v2328_v15 = vpop.eup %2327  ;;  %v3210_v36 = vsel %vm966_vm0, %v963_v1, -1e+30 }
 0x387   : > { %2329 = vpow2.f32 %v1139_v50  ;;  %v1270_v58 = vmul.f32 %v2328_v15, %v3107_v23 }
 0x388   : > { %2331 = vrcp.f32 %v3146_v56 }
 0x389   : > { %v1050_v8 = vpop.xlane.xlu1 %1049 }
 0x38a   : > { %v1370_v31 = vpop.f32.mrf.mxu2  ;;  %v1088_v52 = vsub.f32 %v3132_v20, %v1050_v8  ;;  %v1194_v22 = vpop.xlane.xlu2 %1193 }
 0x38c   : > { %v1145_v16 = vmul.f32 1.442695, %v1088_v52  ;;  %v1614_v52 = vunpack.c.h.bf16 %v430_v51 }
 0x38d   : > { %v3198_v21 = vpop.eup %2329  ;;  %1059 = vmax.xlane.f32.xlu0 %v3196_v18 }
 0x38e   : > { %2333 = vpow2.f32 %v1145_v16  ;;  %1203 = vadd.xlane.f32.xlu1 %v3198_v21  ;;  %v2332_v56 = vpop.eup %2331 }
 0x38f   : > { %v1269_v33 = vmul.f32 %v2332_v56, %v3048_v10 }
 0x391   : > { %v1052_v20 = vpop.xlane.xlu1 %1051  ;;  %v1294_v49 = vpack.c.bf16 %v1270_v58, %v1269_v33 }
 0x392   : > { %v1372_v17 = vpop.f32.mrf.mxu2  ;;  %v1089_v24 = vsub.f32 %v3142_v53, %v1052_v20  ;;  %v1196_v25 = vpop.xlane.xlu2 %1195 }
 0x393   : > { %v1442_v30 = vpack.c.bf16 %v1372_v17, %v1370_v31 }
 0x394   : > { %v3205_v48 = vpop.eup %2333  ;;  %v1147_v35 = vmul.f32 1.442695, %v1089_v24 }
 0x395   : > { %1542 = vmatmul.bf16.gmra.mxu3 %v1442_v30  ;;  %1209 = vadd.xlane.f32.xlu0 %v3205_v48 }
 0x396   : > { %2335 = vpow2.f32 %v1147_v35  ;;  %1061 = vmax.xlane.f32.xlu1 %v3210_v36  ;;  %1394 = vmatmul.bf16.gmra.mxu2 %v1294_v49  ;;  %v432_v35 = vld [vmem:[%s2819_s30 + $0x8] sm:$0xff]  }
 0x397   : > { %2337 = vrcp.f32 %v1194_v22 }
 0x398   : > { %2339 = vrcp.f32 %v1192_v2 }
 0x39a   : > { %v1375_v23 = vpop.f32.mrf.mxu2  ;;  %v1054_v53 = vpop.xlane.xlu2 %1053 }
 0x39b   : > { %v1090_v10 = vsub.f32 %v3150_v59, %v1054_v53 }
 0x39c   : > { %v3214_v55 = vpop.eup %2335 }
 0x39d   : > { %v2338_v26 = vpop.eup %2337  ;;  %v1149_v37 = vmul.f32 1.442695, %v1090_v10 }
 0x39e   : > { %1211 = vadd.xlane.f32.xlu1 %v3214_v55  ;;  %v2340_v9 = vpop.eup %2339  ;;  %v1272_v38 = vmul.f32 %v2338_v26, %v3128_v43 }
 0x39f   : > { %2341 = vpow2.f32 %v1149_v37  ;;  %v1271_v47 = vmul.f32 %v2340_v9, %v3117_v29 }
 0x3a1   : > { %v1295_v0 = vpack.c.bf16 %v1272_v38, %v1271_v47 }
 0x3a2   : > { %v1377_v39 = vpop.f32.mrf.mxu2  ;;  %v1056_v45 = vpop.xlane.xlu2 %1055 }
 0x3a3   : > { %v1443_v5 = vpack.c.bf16 %v1377_v39, %v1375_v23  ;;  %v1091_v11 = vsub.f32 %v3156_v57, %v1056_v45  ;;  %v1616_v45 = vunpack.c.h.bf16 %v432_v35 }
 0x3a5   : > { %1547 = vmatmul.bf16.gmra.mxu3 %v1443_v5  ;;  %v3220_v59 = vpop.eup %2341  ;;  %v1151_v12 = vmul.f32 1.442695, %v1091_v11 }
 0x3a6   : > { %1399 = vmatmul.bf16.gmra.mxu2 %v1295_v0  ;;  %1213 = vadd.xlane.f32.xlu2 %v3220_v59 }
 0x3a7   : > { %2343 = vpow2.f32 %v1151_v12 }
 0x3a8   : > { %2345 = vrcp.f32 %v1196_v25 }
 0x3aa   : > { %v1206_v49 = vpop.xlane.xlu2 %1205 }
 0x3ad   : > { %v3223_v54 = vpop.eup %2343 }
 0x3ae   : > { %1215 = vadd.xlane.f32.xlu0 %v3223_v54  ;;  %v2346_v57 = vpop.eup %2345 }
 0x3af   : > { %v1273_v63 = vmul.f32 %v2346_v57, %v3138_v32 }
 0x3e8   : > { %v1380_v43 = vpop.f32.mrf.mxu2  ;;  %v1198_v29 = vpop.xlane.xlu0 %1197 }
 0x3e9   : > { %2347 = vrcp.f32 %v1198_v29 }
 0x3ef   : > { %v2348_v34 = vpop.eup %2347 }
 0x3f0   : > { %v1382_v28 = vpop.f32.mrf.mxu2  ;;  %v1200_v60 = vpop.xlane.xlu0 %1199  ;;  %v1274_v42 = vmul.f32 %v2348_v34, %v3173_v40  ;;  %v434_v34 = vld [vmem:[%s2819_s30 + $0x10] sm:$0xff]  }
 0x3f1   : > { %v1444_v2 = vpack.c.bf16 %v1382_v28, %v1380_v43  ;;  %2349 = vrcp.f32 %v1200_v60  ;;  %v1208_v60 = vpop.xlane.xlu2 %1207 }
 0x3f2   : > { %v1296_v3 = vpack.c.bf16 %v1274_v42, %v1273_v63 }
 0x3f3   : > { %1552 = vmatmul.bf16.gmra.mxu3 %v1444_v2 }
 0x3f4   : > { %1404 = vmatmul.bf16.gmra.mxu2 %v1296_v3 }
 0x3f7   : > { %v2350_v31 = vpop.eup %2349 }
 0x3f8   : > { %v1533_v46 = vpop.f32.mrf.mxu3  ;;  %v1058_v14 = vpop.xlane.xlu0 %1057  ;;  %v1275_v1 = vmul.f32 %v2350_v31, %v3178_v19 }
 0x3f9   : > { %v1534_v62 = vadd.f32 %v3232_v27, %v1533_v46  ;;  %v1202_v32 = vpop.xlane.xlu1 %1201  ;;  %v1385_v50 = vpop.f32.mrf.mxu2  ;;  %v1092_v40 = vsub.f32 %v3186_v6, %v1058_v14 }
 0x3fa   : > { %2351 = vrcp.f32 %v1202_v32 }
 0x3fb   : > { %v1645_v7 = vadd.f32 %v1613_v61, %v1534_v62  ;;  %v1153_v8 = vmul.f32 1.442695, %v1092_v40  ;;  %v1618_v61 = vunpack.c.h.bf16 %v434_v34 }
 0x3fd   : > { %1677 = vst [vmem:[%s3237_s16] sm:$0xff] %v1645_v7  ;;  %2353 = vpow2.f32 %v1153_v8 }
 0x400   : > { %v1535_v22 = vpop.f32.mrf.mxu3  ;;  %v2352_v15 = vpop.eup %2351 }
 0x401   : > { %v1536_v16 = vadd.f32 %v3232_v27, %v1535_v22  ;;  %v1060_v44 = vpop.xlane.xlu0 %1059  ;;  %v1204_v56 = vpop.xlane.xlu1 %1203  ;;  %v1276_v20 = vmul.f32 %v2352_v15, %v3188_v13 }
 0x402   : > { %v1387_v58 = vpop.f32.mrf.mxu2  ;;  %v1093_v6 = vsub.f32 %v3196_v18, %v1060_v44  ;;  %v1615_v18 = vunpack.c.l.bf16 %v432_v35 }
 0x403   : > { %v1646_v17 = vadd.f32 %v1614_v52, %v1536_v16  ;;  %v1445_v24 = vpack.c.bf16 %v1387_v58, %v1385_v50  ;;  %v3244_v25 = vpop.eup %2353  ;;  %v1297_v33 = vpack.c.bf16 %v1276_v20, %v1275_v1  ;;  %v436_v52 = vld [vmem:[%s2819_s30 + $0x18] sm:$0xff]  }
 0x404   : > { %v1155_v30 = vmul.f32 1.442695, %v1093_v6  ;;  %1217 = vadd.xlane.f32.xlu1 %v3244_v25  ;;  %v1619_v15 = vunpack.c.l.bf16 %v436_v52  ;;  %v1620_v6 = vunpack.c.h.bf16 %v436_v52 }
 0x405   : > { %1678 = vst [vmem:[%s3237_s16 + $0x8] sm:$0xff] %v1646_v17  ;;  %1557 = vmatmul.bf16.gmra.mxu3 %v1445_v24  ;;  %1409 = vmatmul.bf16.gmra.mxu2 %v1297_v33 }
 0x406   : > { %2355 = vpow2.f32 %v1155_v30 }
 0x407   : > { %2357 = vrcp.f32 %v1204_v56 }
 0x408   : > { %v1538_v19 = vpop.f32.mrf.mxu3  ;;  %2359 = vrcp.f32 %v1206_v49 }
 0x409   : > { %v1539_v13 = vadd.f32 %v3232_v27, %v1538_v19  ;;  %v1062_v23 = vpop.xlane.xlu1 %1061  ;;  %v1210_v29 = vpop.xlane.xlu0 %1209 }
 0x40a   : > { %v1390_v53 = vpop.f32.mrf.mxu2  ;;  %v1094_v26 = vsub.f32 %v3210_v36, %v1062_v23 }
 0x40b   : > { %v1647_v10 = vadd.f32 %v1615_v18, %v1539_v13  ;;  %v438_v18 = vld [vmem:[%s2819_s30 + $0x20] sm:$0xff]  }
 0x40c   : > { %v3251_v37 = vpop.eup %2355  ;;  %v1157_v38 = vmul.f32 1.442695, %v1094_v26  ;;  %v1621_v13 = vunpack.c.l.bf16 %v438_v18 }
 0x40d   : > { %v2358_v9 = vpop.eup %2357  ;;  %1679 = vst [vmem:[%s3237_s16 + $0x10] sm:$0xff] %v1647_v10  ;;  %1219 = vadd.xlane.f32.xlu2 %v3251_v37 }
 0x40e   : > { %v2360_v39 = vpop.eup %2359  ;;  %2361 = vpow2.f32 %v1157_v38  ;;  %v1277_v47 = vmul.f32 %v2358_v9, %v3198_v21  ;;  %v1617_v21 = vunpack.c.l.bf16 %v434_v34  ;;  %v1622_v9 = vunpack.c.h.bf16 %v438_v18 }
 0x40f   : > { %v1278_v36 = vmul.f32 %v2360_v39, %v3160_v41  ;;  %2363 = vrcp.f32 %v1210_v29 }
 0x410   : > { %v1540_v5 = vpop.f32.mrf.mxu3  ;;  %2365 = vrcp.f32 %v1208_v60 }
 0x411   : > { %v1541_v11 = vadd.f32 %v3232_v27, %v1540_v5  ;;  %v1298_v57 = vpack.c.bf16 %v1278_v36, %v1277_v47  ;;  %v1212_v22 = vpop.xlane.xlu1 %1211 }
 0x412   : > { %v1392_v0 = vpop.f32.mrf.mxu2 }
 0x413   : > { %v1648_v12 = vadd.f32 %v1616_v45, %v1541_v11  ;;  %v1446_v43 = vpack.c.bf16 %v1392_v0, %v1390_v53 }
 0x414   : > { %v3259_v28 = vpop.eup %2361 }
 0x415   : > { %1680 = vst [vmem:[%s3237_s16 + $0x18] sm:$0xff] %v1648_v12  ;;  %1562 = vmatmul.bf16.gmra.mxu3 %v1446_v43  ;;  %1221 = vadd.xlane.f32.xlu0 %v3259_v28  ;;  %v2364_v3 = vpop.eup %2363  ;;  %v440_v43 = vld [vmem:[%s2819_s30 + $0x28] sm:$0xff]  }
 0x416   : > { %1414 = vmatmul.bf16.gmra.mxu2 %v1298_v57  ;;  %v2366_v51 = vpop.eup %2365  ;;  %v1280_v62 = vmul.f32 %v2364_v3, %v3205_v48  ;;  %v1623_v57 = vunpack.c.l.bf16 %v440_v43 }
 0x417   : > { %v1279_v50 = vmul.f32 %v2366_v51, %v3163_v4 }
 0x418   : > { %v1543_v63 = vpop.f32.mrf.mxu3 }
 0x419   : > { %v1544_v41 = vadd.f32 %v3232_v27, %v1543_v63  ;;  %v1214_v8 = vpop.xlane.xlu2 %1213  ;;  %v1299_v31 = vpack.c.bf16 %v1280_v62, %v1279_v50  ;;  %v442_v50 = vld [vmem:[%s2819_s30 + $0x30] sm:$0xff]  }
 0x41a   : > { %v1395_v42 = vpop.f32.mrf.mxu2  ;;  %2367 = vrcp.f32 %v1214_v8 }
 0x41b   : > { %v1649_v2 = vadd.f32 %v1617_v21, %v1544_v41  ;;  %2369 = vrcp.f32 %v1212_v22  ;;  %v1624_v41 = vunpack.c.h.bf16 %v440_v43 }
 0x41d   : > { %1681 = vst [vmem:[%s3237_s16 + $0x20] sm:$0xff] %v1649_v2 }
 0x420   : > { %v1545_v46 = vpop.f32.mrf.mxu3  ;;  %v2368_v4 = vpop.eup %2367 }
 0x421   : > { %v1546_v14 = vadd.f32 %v3232_v27, %v1545_v46  ;;  %v2370_v58 = vpop.eup %2369  ;;  %v1282_v20 = vmul.f32 %v2368_v4, %v3220_v59  ;;  %v1216_v19 = vpop.xlane.xlu0 %1215 }
 0x422   : > { %v1397_v32 = vpop.f32.mrf.mxu2  ;;  %v1281_v30 = vmul.f32 %v2370_v58, %v3214_v55  ;;  %2371 = vrcp.f32 %v1216_v19 }
 0x423   : > { %v1650_v40 = vadd.f32 %v1618_v61, %v1546_v14  ;;  %v1447_v7 = vpack.c.bf16 %v1397_v32, %v1395_v42 }
 0x424   : > { %v1300_v49 = vpack.c.bf16 %v1282_v20, %v1281_v30 }
 0x425   : > { %1682 = vst [vmem:[%s3237_s16 + $0x28] sm:$0xff] %v1650_v40  ;;  %1567 = vmatmul.bf16.gmra.mxu3 %v1447_v7  ;;  %v1625_v40 = vunpack.c.l.bf16 %v442_v50 }
 0x426   : > { %1419 = vmatmul.bf16.gmra.mxu2 %v1299_v31 }
 0x428   : > { %v1548_v16 = vpop.f32.mrf.mxu3  ;;  %v2372_v55 = vpop.eup %2371 }
 0x429   : > { %v1549_v48 = vadd.f32 %v3232_v27, %v1548_v16  ;;  %v1283_v47 = vmul.f32 %v2372_v55, %v3223_v54 }
 0x42a   : > { %v1400_v44 = vpop.f32.mrf.mxu2 }
 0x42b   : > { %v1651_v56 = vadd.f32 %v1619_v15, %v1549_v48 }
 0x42d   : > { %1683 = vst [vmem:[%s3237_s16 + $0x30] sm:$0xff] %v1651_v56 }
 0x430   : > { %v1550_v1 = vpop.f32.mrf.mxu3 }
 0x431   : > { %v1551_v17 = vadd.f32 %v3232_v27, %v1550_v1 }
 0x432   : > { %v1402_v24 = vpop.f32.mrf.mxu2 }
 0x433   : > { %v1652_v33 = vadd.f32 %v1620_v6, %v1551_v17  ;;  %v1448_v35 = vpack.c.bf16 %v1402_v24, %v1400_v44  ;;  %v444_v44 = vld [vmem:[%s2819_s30 + $0x38] sm:$0xff]  }
 0x434   : > { %v1627_v56 = vunpack.c.l.bf16 %v444_v44  ;;  %v1628_v20 = vunpack.c.h.bf16 %v444_v44 }
 0x435   : > { %1684 = vst [vmem:[%s3237_s16 + $0x38] sm:$0xff] %v1652_v33  ;;  %1572 = vmatmul.bf16.gmra.mxu3 %v1448_v35 }
 0x436   : > { %1424 = vmatmul.bf16.gmra.mxu2 %v1300_v49  ;;  %v446_v49 = vld [vmem:[%s2819_s30 + $0x40] sm:$0xff]  }
 0x437   : > { %v1629_v18 = vunpack.c.l.bf16 %v446_v49 }
 0x476   : > { %v1553_v23 = vpop.f32.mrf.mxu3 }
 0x477   : > { %v1554_v53 = vadd.f32 %v3232_v27, %v1553_v23  ;;  %v1405_v59 = vpop.f32.mrf.mxu2  ;;  %v1218_v10 = vpop.xlane.xlu1 %1217 }
 0x478   : > { %2373 = vrcp.f32 %v1218_v10 }
 0x479   : > { %v1653_v26 = vadd.f32 %v1621_v13, %v1554_v53 }
 0x47b   : > { %1685 = vst [vmem:[%s3237_s16 + $0x40] sm:$0xff] %v1653_v26 }
 0x47e   : > { %v2374_v38 = vpop.eup %2373  ;;  %v1555_v39 = vpop.f32.mrf.mxu3 }
 0x47f   : > { %v1556_v45 = vadd.f32 %v3232_v27, %v1555_v39  ;;  %v1407_v5 = vpop.f32.mrf.mxu2  ;;  %v1284_v11 = vmul.f32 %v2374_v38, %v3244_v25  ;;  %v448_v39 = vld [vmem:[%s2819_s30 + $0x48] sm:$0xff]  }
 0x480   : > { %v1449_v0 = vpack.c.bf16 %v1407_v5, %v1405_v59  ;;  %v1220_v29 = vpop.xlane.xlu2 %1219  ;;  %v1630_v59 = vunpack.c.h.bf16 %v446_v49  ;;  %v458_v49 = vld [vmem:[%s2819_s30 + $0x70] sm:$0xff]  }
 0x481   : > { %v1654_v36 = vadd.f32 %v1622_v9, %v1556_v45  ;;  %v1301_v12 = vpack.c.bf16 %v1284_v11, %v1283_v47  ;;  %2375 = vrcp.f32 %v1220_v29  ;;  %v1631_v45 = vunpack.c.l.bf16 %v448_v39 }
 0x482   : > { %1577 = vmatmul.bf16.gmra.mxu3 %v1449_v0 }
 0x483   : > { %1686 = vst [vmem:[%s3237_s16 + $0x48] sm:$0xff] %v1654_v36  ;;  %1429 = vmatmul.bf16.gmra.mxu2 %v1301_v12  ;;  %v1632_v36 = vunpack.c.h.bf16 %v448_v39 }
 0x487   : > { %v2376_v25 = vpop.eup %2375 }
 0x488   : > { %v1558_v34 = vpop.f32.mrf.mxu3  ;;  %v1410_v21 = vpop.f32.mrf.mxu2  ;;  %v1285_v61 = vmul.f32 %v2376_v25, %v3251_v37  ;;  %v1626_v37 = vunpack.c.h.bf16 %v442_v50 }
 0x489   : > { %v1559_v60 = vadd.f32 %v3232_v27, %v1558_v34  ;;  %v1222_v63 = vpop.xlane.xlu0 %1221 }
 0x48a   : > { %2377 = vrcp.f32 %v1222_v63 }
 0x48b   : > { %v1655_v54 = vadd.f32 %v1623_v57, %v1559_v60  ;;  %v450_v60 = vld [vmem:[%s2819_s30 + $0x50] sm:$0xff]  }
 0x48d   : > { %1687 = vst [vmem:[%s3237_s16 + $0x50] sm:$0xff] %v1655_v54 }
 0x490   : > { %v2378_v42 = vpop.eup %2377  ;;  %v1560_v2 = vpop.f32.mrf.mxu3 }
 0x491   : > { %v1561_v3 = vadd.f32 %v3232_v27, %v1560_v2  ;;  %v1412_v51 = vpop.f32.mrf.mxu2  ;;  %v1286_v46 = vmul.f32 %v2378_v42, %v3259_v28  ;;  %v1634_v42 = vunpack.c.h.bf16 %v450_v60 }
 0x492   : > { %v1450_v62 = vpack.c.bf16 %v1412_v51, %v1410_v21  ;;  %v1633_v21 = vunpack.c.l.bf16 %v450_v60 }
 0x493   : > { %v1656_v14 = vadd.f32 %v1624_v41, %v1561_v3  ;;  %v1302_v32 = vpack.c.bf16 %v1286_v46, %v1285_v61 }
 0x494   : > { %1582 = vmatmul.bf16.gmra.mxu3 %v1450_v62  ;;  %v452_v62 = vld [vmem:[%s2819_s30 + $0x58] sm:$0xff]  }
 0x495   : > { %1688 = vst [vmem:[%s3237_s16 + $0x58] sm:$0xff] %v1656_v14  ;;  %1434 = vmatmul.bf16.gmra.mxu2 %v1302_v32  ;;  %v1635_v14 = vunpack.c.l.bf16 %v452_v62 }
 0x498   : > { %v1563_v7 = vpop.f32.mrf.mxu3 }
 0x499   : > { %v1564_v8 = vadd.f32 %v3232_v27, %v1563_v7  ;;  %v1415_v31 = vpop.f32.mrf.mxu2  ;;  %v1636_v7 = vunpack.c.h.bf16 %v452_v62 }
 0x49b   : > { %v1657_v52 = vadd.f32 %v1625_v40, %v1564_v8 }
 0x49d   : > { %1689 = vst [vmem:[%s3237_s16 + $0x60] sm:$0xff] %v1657_v52 }
 0x4a0   : > { %v1565_v22 = vpop.f32.mrf.mxu3 }
 0x4a1   : > { %v1566_v28 = vadd.f32 %v3232_v27, %v1565_v22  ;;  %v1417_v15 = vpop.f32.mrf.mxu2 }
 0x4a2   : > { %v1451_v16 = vpack.c.bf16 %v1417_v15, %v1415_v31 }
 0x4a3   : > { %v1658_v48 = vadd.f32 %v1626_v37, %v1566_v28  ;;  %v454_v37 = vld [vmem:[%s2819_s30 + $0x60] sm:$0xff]  }
 0x4a4   : > { %1587 = vmatmul.bf16.gmra.mxu3 %v1451_v16  ;;  %v1637_v22 = vunpack.c.l.bf16 %v454_v37 }
 0x4a5   : > { %1690 = vst [vmem:[%s3237_s16 + $0x68] sm:$0xff] %v1658_v48  ;;  %v1638_v48 = vunpack.c.h.bf16 %v454_v37 }
 0x4a8   : > { %v1568_v4 = vpop.f32.mrf.mxu3 }
 0x4a9   : > { %v1569_v58 = vadd.f32 %v3232_v27, %v1568_v4  ;;  %v1420_v6 = vpop.f32.mrf.mxu2 }
 0x4ab   : > { %v1659_v1 = vadd.f32 %v1627_v56, %v1569_v58  ;;  %v456_v58 = vld [vmem:[%s2819_s30 + $0x68] sm:$0xff]  }
 0x4ad   : > { %1691 = vst [vmem:[%s3237_s16 + $0x70] sm:$0xff] %v1659_v1 }
 0x4b0   : > { %v1570_v17 = vpop.f32.mrf.mxu3 }
 0x4b1   : > { %v1571_v24 = vadd.f32 %v3232_v27, %v1570_v17  ;;  %v1422_v30 = vpop.f32.mrf.mxu2 }
 0x4b2   : > { %v1452_v33 = vpack.c.bf16 %v1422_v30, %v1420_v6  ;;  %v1639_v6 = vunpack.c.l.bf16 %v456_v58 }
 0x4b3   : > { %v1660_v35 = vadd.f32 %v1628_v20, %v1571_v24  ;;  %v1640_v24 = vunpack.c.h.bf16 %v456_v58 }
 0x4b4   : > { %1592 = vmatmul.bf16.gmra.mxu3 %v1452_v33 }
 0x4b5   : > { %1692 = vst [vmem:[%s3237_s16 + $0x78] sm:$0xff] %v1660_v35 }
 0x4b8   : > { %v1573_v19 = vpop.f32.mrf.mxu3 }
 0x4b9   : > { %v1574_v13 = vadd.f32 %v3232_v27, %v1573_v19  ;;  %v1425_v23 = vpop.f32.mrf.mxu2 }
 0x4bb   : > { %v1661_v53 = vadd.f32 %v1629_v18, %v1574_v13  ;;  %v1641_v18 = vunpack.c.l.bf16 %v458_v49 }
 0x4bd   : > { %1693 = vst [vmem:[%s3237_s16 + $0x80] sm:$0xff] %v1661_v53  ;;  %v1642_v53 = vunpack.c.h.bf16 %v458_v49 }
 0x4c0   : > { %v1575_v10 = vpop.f32.mrf.mxu3 }
 0x4c1   : > { %v1576_v26 = vadd.f32 %v3232_v27, %v1575_v10  ;;  %v1427_v55 = vpop.f32.mrf.mxu2 }
 0x4c2   : > { %v1453_v9 = vpack.c.bf16 %v1427_v55, %v1425_v23  ;;  %v460_v55 = vld [vmem:[%s2819_s30 + $0x78] sm:$0xff]  }
 0x4c3   : > { %v1662_v38 = vadd.f32 %v1630_v59, %v1576_v26 }
 0x4c4   : > { %1597 = vmatmul.bf16.gmra.mxu3 %v1453_v9  ;;  %v1643_v9 = vunpack.c.l.bf16 %v460_v55 }
 0x4c5   : > { %1694 = vst [vmem:[%s3237_s16 + $0x88] sm:$0xff] %v1662_v38 }
 0x505   : > { %v1578_v5 = vpop.f32.mrf.mxu3 }
 0x506   : > { %v1579_v47 = vadd.f32 %v3232_v27, %v1578_v5  ;;  %v1430_v11 = vpop.f32.mrf.mxu2  ;;  %v1644_v5 = vunpack.c.h.bf16 %v460_v55 }
 0x508   : > { %v1663_v0 = vadd.f32 %v1631_v45, %v1579_v47 }
 0x50a   : > { %1695 = vst [vmem:[%s3237_s16 + $0x90] sm:$0xff] %v1663_v0 }
 0x50d   : > { %v1580_v12 = vpop.f32.mrf.mxu3 }
 0x50e   : > { %v1581_v43 = vadd.f32 %v3232_v27, %v1580_v12  ;;  %v1432_v29 = vpop.f32.mrf.mxu2 }
 0x50f   : > { %v1454_v57 = vpack.c.bf16 %v1432_v29, %v1430_v11 }
 0x510   : > { %v1664_v34 = vadd.f32 %v1632_v36, %v1581_v43 }
 0x511   : > { %1602 = vmatmul.bf16.gmra.mxu3 %v1454_v57 }
 0x512   : > { %1696 = vst [vmem:[%s3237_s16 + $0x98] sm:$0xff] %v1664_v34 }
 0x517   : > { %v1583_v63 = vpop.f32.mrf.mxu3 }
 0x518   : > { %v1584_v54 = vadd.f32 %v3232_v27, %v1583_v63  ;;  %v1435_v25 = vpop.f32.mrf.mxu2 }
 0x51a   : > { %v1665_v41 = vadd.f32 %v1633_v21, %v1584_v54 }
 0x51c   : > { %1697 = vst [vmem:[%s3237_s16 + $0xa0] sm:$0xff] %v1665_v41 }
 0x51f   : > { %v1585_v2 = vpop.f32.mrf.mxu3 }
 0x520   : > { %v1586_v3 = vadd.f32 %v3232_v27, %v1585_v2  ;;  %v1437_v51 = vpop.f32.mrf.mxu2 }
 0x521   : > { %v1455_v61 = vpack.c.bf16 %v1437_v51, %v1435_v25 }
 0x522   : > { %v1666_v46 = vadd.f32 %v1634_v42, %v1586_v3 }
 0x523   : > { %1607 = vmatmul.bf16.gmra.mxu3 %v1455_v61 }
 0x524   : > { %1698 = vst [vmem:[%s3237_s16 + $0xa8] sm:$0xff] %v1666_v46 }
 0x527   : > { %v1588_v32 = vpop.f32.mrf.mxu3 }
 0x528   : > { %v1589_v50 = vadd.f32 %v3232_v27, %v1588_v32 }
 0x52a   : > { %v1667_v40 = vadd.f32 %v1635_v14, %v1589_v50 }
 0x52c   : > { %1699 = vst [vmem:[%s3237_s16 + $0xb0] sm:$0xff] %v1667_v40 }
 0x52f   : > { %v1590_v8 = vpop.f32.mrf.mxu3 }
 0x530   : > { %v1591_v31 = vadd.f32 %v3232_v27, %v1590_v8 }
 0x532   : > { %v1668_v52 = vadd.f32 %v1636_v7, %v1591_v31 }
 0x534   : > { %1700 = vst [vmem:[%s3237_s16 + $0xb8] sm:$0xff] %v1668_v52 }
 0x537   : > { %v1593_v28 = vpop.f32.mrf.mxu3 }
 0x538   : > { %v1594_v15 = vadd.f32 %v3232_v27, %v1593_v28 }
 0x53a   : > { %v1669_v16 = vadd.f32 %v1637_v22, %v1594_v15 }
 0x53c   : > { %1701 = vst [vmem:[%s3237_s16 + $0xc0] sm:$0xff] %v1669_v16 }
 0x53f   : > { %v1595_v44 = vpop.f32.mrf.mxu3 }
 0x540   : > { %v1596_v56 = vadd.f32 %v3232_v27, %v1595_v44 }
 0x542   : > { %v1670_v4 = vadd.f32 %v1638_v48, %v1596_v56 }
 0x544   : > { %1702 = vst [vmem:[%s3237_s16 + $0xc8] sm:$0xff] %v1670_v4 }
 0x547   : > { %v1598_v1 = vpop.f32.mrf.mxu3 }
 0x548   : > { %v1599_v20 = vadd.f32 %v3232_v27, %v1598_v1 }
 0x54a   : > { %v1671_v17 = vadd.f32 %v1639_v6, %v1599_v20 }
 0x54c   : > { %1703 = vst [vmem:[%s3237_s16 + $0xd0] sm:$0xff] %v1671_v17 }
 0x54f   : > { %v1600_v30 = vpop.f32.mrf.mxu3 }
 0x550   : > { %v1601_v33 = vadd.f32 %v3232_v27, %v1600_v30 }
 0x552   : > { %v1672_v35 = vadd.f32 %v1640_v24, %v1601_v33 }
 0x554   : > { %1704 = vst [vmem:[%s3237_s16 + $0xd8] sm:$0xff] %v1672_v35 }
 0x594   : > { %v1603_v19 = vpop.f32.mrf.mxu3 }
 0x595   : > { %v1604_v13 = vadd.f32 %v3232_v27, %v1603_v19 }
 0x597   : > { %v1673_v23 = vadd.f32 %v1641_v18, %v1604_v13 }
 0x599   : > { %1705 = vst [vmem:[%s3237_s16 + $0xe0] sm:$0xff] %v1673_v23 }
 0x59c   : > { %v1605_v59 = vpop.f32.mrf.mxu3 }
 0x59d   : > { %v1606_v10 = vadd.f32 %v3232_v27, %v1605_v59 }
 0x59f   : > { %v1674_v26 = vadd.f32 %v1642_v53, %v1606_v10 }
 0x5a1   : > { %1706 = vst [vmem:[%s3237_s16 + $0xe8] sm:$0xff] %v1674_v26 }
 0x5a6   : > { %v1608_v38 = vpop.f32.mrf.mxu3 }
 0x5a7   : > { %v1609_v39 = vadd.f32 %v3232_v27, %v1608_v38 }
 0x5a9   : > { %v1675_v45 = vadd.f32 %v1643_v9, %v1609_v39 }
 0x5ab   : > { %1707 = vst [vmem:[%s3237_s16 + $0xf0] sm:$0xff] %v1675_v45 }
 0x5ae   : > { %v1610_v47 = vpop.f32.mrf.mxu3 }
 0x5af   : > { %v1611_v11 = vadd.f32 %v3232_v27, %v1610_v47 }
 0x5b1   : > { %v1676_v0 = vadd.f32 %v1644_v5, %v1611_v11 }
 0x5b3   : > { %1708 = vst [vmem:[%s3237_s16 + $0xf8] sm:$0xff] %v1676_v0 }
 0x5b4   : > { %2556 = shalt.err (!%p2553_p13)
}
 0x5b5   : > { %s2629_s26 = smov 128   ;;  %s2630_s13 = smov 8  }
 0x5b6   : > { %2166 = dma.vmem_to_hbm [thread:$0]  (%p2762_p0), %s1725_s1, 4096, %s1727_s18, %s1710_s19, %s2629_s26, %s2629_s26, %s2630_s13  }
 0x5b7 PF: > { %s3418_s23 = sld [smem:[#allocation18_spill]]  ;;  %s1741_s8 = sand.u32 1, %s2603_s24  }
 0x5b8   : > { %p2186_p3 = pnand %p1878_p4, %p2766_p2  ;;  %s1742_s10 = scalar_lea.sflag [#allocation4], %s1741_s8 }
 0x5ba   : > { %p2187_p5 = pneg %p2186_p3 }
 0x5bc   : > { %2598 = dma.done.wait (%p2187_p5), %s1742_s10, 4096  }
 0x5bd   : > { %2600 = vsyncadd (%p2187_p5), %s1742_s10, 4294963200  ;;  %s24_s29 = sadd.s32 1, %s3418_s23   ;;  %s3419_s15 = sld [smem:[#allocation16_spill]] }
 0x5be   : > { %p21_p1 = scmp.ge.s32.totalorder %s24_s29, 4   ;;  %s3420_s26 = sld [smem:[#allocation20_spill]] }
 0x5bf   : > { %s3421_s27 = sld [smem:[#allocation17_spill]]  ;;  %s3423_s24 = smov %s2607_s25 }
 0x5c0   : > { %s3422_s28 = sld [smem:[#allocation19_spill]]  ;;  %23 = sbr.rel (!%p21_p1) target bundleno = 11 (0xb), region = 123 }
 0x5c3   : > { %s3424_s25 = smov %s3419_s15 }
 0x5c5   :  { %1748 = vsyncpa [#allocation3], 1 }
 0x5c6   :  { %1750 = vsyncpa [#allocation3 + $0x1], 1 }
 0x5c7   :  { %1751 = vsyncpa [#allocation6], 1 }
 0x5c8   :  { %1752 = vsyncpa [#allocation4], 1 }
 0x5c9   :  { %1754 = vsyncpa [#allocation4 + $0x1], 1 }

</bundles_post_ra>
